<compile_context>
chip_gen: v7x
topology: tpu7x:2x2x1
jax: 0.10.0
libtpu: 0.0.40
codegen_flags: <defaults>
</compile_context>

<pallas_src>
import functools

import jax
import jax.numpy as jnp
from jax import lax
from jax.experimental import pallas as pl
from jax.experimental.pallas import tpu as pltpu


def _round_up(x, m):
    return ((x + m - 1) // m) * m


# ----------------------------------------------------------------------------
# Fused Pallas kernel: both GCN branches + pooling + MLP head + contrastive
# ----------------------------------------------------------------------------

def _fused_gcn_kernel(*refs, num_layers, num_graphs, nodes_per_graph,
                      hidden_dim, temperature, negative_w):
    it = iter(refs)
    sc_a_ref = next(it)          # [G, npg, npg] block-diag normalized A (sc)
    sc_x_ref = next(it)          # [N, F_sc]
    fc_a_ref = next(it)          # [G, npg, npg] block-diag normalized A (fc)
    fc_x_ref = next(it)          # [N, F_fc]
    sc_w = [next(it) for _ in range(num_layers)]
    sc_b = [next(it) for _ in range(num_layers)]
    fc_w = [next(it) for _ in range(num_layers)]
    fc_b = [next(it) for _ in range(num_layers)]
    w1_ref = next(it)            # [2H, H]
    b1_ref = next(it)            # [1, H]
    w2_ref = next(it)            # [H, C_pad]  (zero-padded columns)
    b2_ref = next(it)            # [1, C_pad]  (padded columns = -1e30)
    o_ref = next(it)             # [B, C_pad]

    G = num_graphs
    npg = nodes_per_graph

    def gcn_branch(a_ref, x, ws, bs):
        """Stacked GCNConv+ReLU layers, then global_add_pool (row-sums)."""
        h = x
        for li in range(num_layers):
            w = ws[li][...]
            b = bs[li][...]
            f_in, f_out = w.shape
            if f_in < f_out:
                # Cheaper order when F_in < H: (A_hat @ X) @ W
                ah = jnp.concatenate(
                    [jnp.dot(a_ref[g], h[g * npg:(g + 1) * npg, :],
                             preferred_element_type=jnp.float32)
                     for g in range(G)], axis=0)
                z = jnp.dot(ah, w, preferred_element_type=jnp.float32)
            else:
                # Standard order: A_hat @ (X @ W)
                xw = jnp.dot(h, w, preferred_element_type=jnp.float32)
                z = jnp.concatenate(
                    [jnp.dot(a_ref[g], xw[g * npg:(g + 1) * npg, :],
                             preferred_element_type=jnp.float32)
                     for g in range(G)], axis=0)
            h = jnp.maximum(z + b, 0.0)
        # global_add_pool == per-graph row-sum (graphs are disjoint blocks)
        return jnp.concatenate(
            [jnp.sum(h[g * npg:(g + 1) * npg, :], axis=0, keepdims=True)
             for g in range(G)], axis=0)                       # [G, H]

    sc_pool = gcn_branch(sc_a_ref, sc_x_ref[...], sc_w, sc_b)   # [B, H]
    fc_pool = gcn_branch(fc_a_ref, fc_x_ref[...], fc_w, fc_b)   # [B, H]
    batch = num_graphs

    # ---- classification head: x = cat([sc, fc], 1) -> fc1 -> relu -> fc2 ----
    # cat + matmul == split-weight matmuls (avoids an in-kernel lane concat)
    w1 = w1_ref[...]
    hid = (jnp.dot(sc_pool, w1[:hidden_dim, :],
                   preferred_element_type=jnp.float32)
           + jnp.dot(fc_pool, w1[hidden_dim:, :],
                     preferred_element_type=jnp.float32)
           + b1_ref[...])
    hid = jnp.maximum(hid, 0.0)
    # F.dropout(..., training=False) is identity at inference time.
    logits = jnp.dot(hid, w2_ref[...],
                     preferred_element_type=jnp.float32) + b2_ref[...]
    # Padded class columns carry a -1e30 bias -> exp underflows to 0, so the
    # log_softmax over the real classes is exact despite lane padding.
    m = jnp.max(logits, axis=-1, keepdims=True)
    lse = jnp.log(jnp.sum(jnp.exp(logits - m), axis=-1, keepdims=True)) + m
    log_probs = logits - lse                                    # [B, C_pad]

    # ---- contrastive (CLIP-style) loss term ----
    def l2norm(v):   # F.normalize(dim=1), eps=1e-12
        nrm = jnp.sqrt(jnp.sum(v * v, axis=1, keepdims=True))
        return v / jnp.maximum(nrm, 1e-12)

    scn = l2norm(sc_pool)
    fcn = l2norm(fc_pool)
    inv_t = 1.0 / temperature

    def simt(a, b):  # a @ b.T via dot_general (contract last dims)
        return lax.dot_general(a, b, (((1,), (1,)), ((), ())),
                               preferred_element_type=jnp.float32)

    lps = simt(scn, fcn) * inv_t        # logits_per_sc
    lpf = simt(fcn, scn) * inv_t        # logits_per_fc
    lcs = simt(scn, scn) * inv_t        # logits_clstr_sc
    lcf = simt(fcn, fcn) * inv_t        # logits_clstr_fc

    row = lax.broadcasted_iota(jnp.int32, (batch, batch), 0)
    col = lax.broadcasted_iota(jnp.int32, (batch, batch), 1)
    eye = (row == col).astype(jnp.float32)
    off_diag = 1.0 - eye

    neg_sc = lcs * off_diag * negative_w
    neg_fc = lcf * off_diag * negative_w

    def contrast_loss(pos, neg):
        # identical to: -log((softmax(cat([pos, neg],1),1) * cat([eye,0],1)).sum(1))
        mm = jnp.maximum(jnp.max(pos, axis=1, keepdims=True),
                         jnp.max(neg, axis=1, keepdims=True))
        denom = (jnp.sum(jnp.exp(pos - mm), axis=1, keepdims=True)
                 + jnp.sum(jnp.exp(neg - mm), axis=1, keepdims=True))
        diag = jnp.sum(pos * eye, axis=1, keepdims=True)
        return jnp.log(denom) - (diag - mm)                     # [B, 1]

    loss = 0.5 * (jnp.mean(contrast_loss(lps, neg_sc))
                  + jnp.mean(contrast_loss(lpf, neg_fc)))

    o_ref[...] = log_probs + loss


def _full_block_spec(shape):
    zeros = (0,) * len(shape)

    def index_map(i):
        return zeros

    return pl.BlockSpec(shape, index_map)


def gcn_forward(params, sc_a_blocks, sc_x, fc_a_blocks, fc_x, *,
                num_graphs, nodes_per_graph, num_classes, temperature,
                negative_w):
    num_layers = len(params["sc_w"])
    hidden = params["sc_w"][0].shape[1]
    c_pad = params["fc2_w"].shape[1]
    batch = num_graphs

    inputs = [sc_a_blocks, sc_x, fc_a_blocks, fc_x]
    inputs += list(params["sc_w"]) + list(params["sc_b"])
    inputs += list(params["fc_w"]) + list(params["fc_b"])
    inputs += [params["fc1_w"], params["fc1_b"],
               params["fc2_w"], params["fc2_b"]]

    kernel = functools.partial(
        _fused_gcn_kernel, num_layers=num_layers, num_graphs=num_graphs,
        nodes_per_graph=nodes_per_graph, hidden_dim=hidden,
        temperature=temperature, negative_w=negative_w)

    # Advisory cost estimate so XLA schedules around the fused custom call.
    n = num_graphs * nodes_per_graph
    flops = 0
    for f0 in (sc_x.shape[1], fc_x.shape[1]):
        dims = [f0] + [hidden] * (num_layers - 1)
        for f_in in dims:
            flops += 2 * num_graphs * nodes_per_graph ** 2 * min(f_in, hidden)
            flops += 2 * n * f_in * hidden
    flops += 2 * batch * (2 * hidden) * hidden        # fc1
    flops += 2 * batch * hidden * c_pad               # fc2
    flops += 4 * 2 * batch * batch * hidden           # similarity matmuls
    transcendentals = batch * c_pad + 4 * batch * batch + 8 * batch
    bytes_accessed = sum(int(a.size) * a.dtype.itemsize for a in inputs)
    bytes_accessed += batch * c_pad * 4

    out_pad = pl.pallas_call(
        kernel,
        out_shape=jax.ShapeDtypeStruct((batch, c_pad), jnp.float32),
        grid=(1,),
        in_specs=[_full_block_spec(a.shape) for a in inputs],
        out_specs=pl.BlockSpec((batch, c_pad), lambda i: (0, 0)),
        compiler_params=pltpu.CompilerParams(
            dimension_semantics=("arbitrary",),
            vmem_limit_bytes=32 * 1024 * 1024),
        cost_estimate=pl.CostEstimate(flops=int(flops),
                                      transcendentals=int(transcendentals),
                                      bytes_accessed=int(bytes_accessed)),
    )(*inputs)
    # Drop lane padding of the class dimension (output is lane-dense in HBM).
    return out_pad[:, :num_classes]


# ----------------------------------------------------------------------------
# Plain-JAX glue: adjacency normalization, synthetic edges, parameters
# ----------------------------------------------------------------------------

def build_gcn_adjacency_blocks(edge_index, num_graphs, nodes_per_graph):
    """Dense PyG gcn_norm (self-loops + D^-1/2 (A+I) D^-1/2), then keep only
    the per-graph diagonal blocks (PyG-batched graphs are disjoint)."""
    n = num_graphs * nodes_per_graph
    src, dst = edge_index[0], edge_index[1]
    loops = jnp.arange(n, dtype=src.dtype)
    src = jnp.concatenate([src, loops])
    dst = jnp.concatenate([dst, loops])
    a = jnp.zeros((n, n), jnp.float32).at[dst, src].add(1.0)
    deg = jnp.sum(a, axis=1)
    dinv = jnp.where(deg > 0, 1.0 / jnp.sqrt(deg), 0.0)
    a_hat = a * dinv[:, None] * dinv[None, :]
    a4 = a_hat.reshape(num_graphs, nodes_per_graph, num_graphs,
                       nodes_per_graph)
    idx = jnp.arange(num_graphs)
    return a4[idx, :, idx, :]                                   # [G, npg, npg]


def make_ring_edges(num_graphs, nodes_per_graph):
    """Undirected ring within each graph (deterministic synthetic topology)."""
    srcs, dsts = [], []
    for g in range(num_graphs):
        base = g * nodes_per_graph
        for k in range(nodes_per_graph):
            a = base + k
            b = base + (k + 1) % nodes_per_graph
            srcs += [a, b]
            dsts += [b, a]
    return jnp.array([srcs, dsts], dtype=jnp.int32)


def init_params(key, sc_features, fc_features, hidden_dim, num_layers,
                num_classes):
    c_pad = _round_up(num_classes, 128)
    keys = jax.random.split(key, 4 * num_layers + 4)
    ki = iter(range(len(keys)))

    def nrm(k, shape, scale=0.1):
        return scale * jax.random.normal(keys[k], shape, dtype=jnp.float32)

    params = {"sc_w": [], "sc_b": [], "fc_w": [], "fc_b": []}
    params["sc_w"].append(nrm(next(ki), (sc_features, hidden_dim)))
    params["sc_b"].append(nrm(next(ki), (1, hidden_dim)))
    params["fc_w"].append(nrm(next(ki), (fc_features, hidden_dim)))
    params["fc_b"].append(nrm(next(ki), (1, hidden_dim)))
    for _ in range(num_layers - 1):
        params["sc_w"].append(nrm(next(ki), (hidden_dim, hidden_dim)))
        params["sc_b"].append(nrm(next(ki), (1, hidden_dim)))
        params["fc_w"].append(nrm(next(ki), (hidden_dim, hidden_dim)))
        params["fc_b"].append(nrm(next(ki), (1, hidden_dim)))
    params["fc1_w"] = nrm(next(ki), (2 * hidden_dim, hidden_dim))
    params["fc1_b"] = nrm(next(ki), (1, hidden_dim))
    # fc2 is lane-padded: zero weight columns + -1e30 bias for padded classes
    # so the in-kernel log_softmax over the real classes is exact.
    fc2_w = jnp.zeros((hidden_dim, c_pad), jnp.float32)
    fc2_w = fc2_w.at[:, :num_classes].set(nrm(next(ki),
                                              (hidden_dim, num_classes)))
    fc2_b = jnp.full((1, c_pad), -1e30, jnp.float32)
    fc2_b = fc2_b.at[:, :num_classes].set(nrm(next(ki), (1, num_classes)))
    params["fc2_w"] = fc2_w
    params["fc2_b"] = fc2_b
    return params


# ----------------------------------------------------------------------------
# Main
# ----------------------------------------------------------------------------

if __name__ == "__main__":
    # args-equivalent hyper-parameters (small, consistent with the module)
    SC_FEATURES = 16
    FC_FEATURES = 12
    HIDDEN_DIM = 32
    NUM_LAYERS = 2
    NUM_CLASSES = 3
    TEMPERATURE = 0.5
    NEGATIVE_W = 0.8
    NUM_GRAPHS = 4          # batch of graphs
    NODES_PER_GRAPH = 16
    N = NUM_GRAPHS * NODES_PER_GRAPH

    key = jax.random.PRNGKey(0)
    k_sc, k_fc, k_par = jax.random.split(key, 3)

    sc_x = jax.random.normal(k_sc, (N, SC_FEATURES), dtype=jnp.float32)
    fc_x = jax.random.normal(k_fc, (N, FC_FEATURES), dtype=jnp.float32)

    sc_edge_index = make_ring_edges(NUM_GRAPHS, NODES_PER_GRAPH)
    fc_edge_index = make_ring_edges(NUM_GRAPHS, NODES_PER_GRAPH)
    sc_a_blk = build_gcn_adjacency_blocks(sc_edge_index, NUM_GRAPHS,
                                          NODES_PER_GRAPH)
    fc_a_blk = build_gcn_adjacency_blocks(fc_edge_index, NUM_GRAPHS,
                                          NODES_PER_GRAPH)

    params = init_params(k_par, SC_FEATURES, FC_FEATURES, HIDDEN_DIM,
                         NUM_LAYERS, NUM_CLASSES)

    # TODO(synk): dropout is omitted (training=False identity); add a
    # PRNG-masked dropout if training-mode parity is ever needed.
    fwd = jax.jit(functools.partial(
        gcn_forward, num_graphs=NUM_GRAPHS, nodes_per_graph=NODES_PER_GRAPH,
        num_classes=NUM_CLASSES, temperature=TEMPERATURE,
        negative_w=NEGATIVE_W))
    out = fwd(params, sc_a_blk, sc_x, fc_a_blk, fc_x)
    out = jax.block_until_ready(out)

    assert out.shape == (NUM_GRAPHS, NUM_CLASSES)
    assert bool(jnp.all(jnp.isfinite(out)))
    print("KERNEL_OK")
</pallas_src>

<mosaic_0001>
module attributes {stable_mosaic.version = 11 : i64} {
  func.func @_fused_gcn_kernel(%arg0: i32, %arg1: memref<4x16x16xf32, #tpu.memory_space<vmem>>, %arg2: memref<64x16xf32, #tpu.memory_space<vmem>>, %arg3: memref<4x16x16xf32, #tpu.memory_space<vmem>>, %arg4: memref<64x12xf32, #tpu.memory_space<vmem>>, %arg5: memref<16x32xf32, #tpu.memory_space<vmem>>, %arg6: memref<32x32xf32, #tpu.memory_space<vmem>>, %arg7: memref<1x32xf32, #tpu.memory_space<vmem>>, %arg8: memref<1x32xf32, #tpu.memory_space<vmem>>, %arg9: memref<12x32xf32, #tpu.memory_space<vmem>>, %arg10: memref<32x32xf32, #tpu.memory_space<vmem>>, %arg11: memref<1x32xf32, #tpu.memory_space<vmem>>, %arg12: memref<1x32xf32, #tpu.memory_space<vmem>>, %arg13: memref<64x32xf32, #tpu.memory_space<vmem>>, %arg14: memref<1x32xf32, #tpu.memory_space<vmem>>, %arg15: memref<32x128xf32, #tpu.memory_space<vmem>>, %arg16: memref<1x128xf32, #tpu.memory_space<vmem>>, %arg17: memref<4x128xf32, #tpu.memory_space<vmem>>) attributes {dimension_semantics = [#tpu.dimension_semantics<arbitrary>], iteration_bounds = array<i64: 1>, scalar_prefetch = 0 : i64, scratch_operands = 0 : i64, tpu.core_type = #tpu.core_type<tc>, window_params = [{pipeline_mode = #tpu.pipeline_mode<synchronous>, transform_indices = @transform_0, window_bounds = array<i64: 4, 16, 16>}, {pipeline_mode = #tpu.pipeline_mode<synchronous>, transform_indices = @transform_1, window_bounds = array<i64: 64, 16>}, {pipeline_mode = #tpu.pipeline_mode<synchronous>, transform_indices = @transform_2, window_bounds = array<i64: 4, 16, 16>}, {pipeline_mode = #tpu.pipeline_mode<synchronous>, transform_indices = @transform_3, window_bounds = array<i64: 64, 12>}, {pipeline_mode = #tpu.pipeline_mode<synchronous>, transform_indices = @transform_4, window_bounds = array<i64: 16, 32>}, {pipeline_mode = #tpu.pipeline_mode<synchronous>, transform_indices = @transform_5, window_bounds = array<i64: 32, 32>}, {pipeline_mode = #tpu.pipeline_mode<synchronous>, transform_indices = @transform_6, window_bounds = array<i64: 1, 32>}, {pipeline_mode = #tpu.pipeline_mode<synchronous>, transform_indices = @transform_7, window_bounds = array<i64: 1, 32>}, {pipeline_mode = #tpu.pipeline_mode<synchronous>, transform_indices = @transform_8, window_bounds = array<i64: 12, 32>}, {pipeline_mode = #tpu.pipeline_mode<synchronous>, transform_indices = @transform_9, window_bounds = array<i64: 32, 32>}, {pipeline_mode = #tpu.pipeline_mode<synchronous>, transform_indices = @transform_10, window_bounds = array<i64: 1, 32>}, {pipeline_mode = #tpu.pipeline_mode<synchronous>, transform_indices = @transform_11, window_bounds = array<i64: 1, 32>}, {pipeline_mode = #tpu.pipeline_mode<synchronous>, transform_indices = @transform_12, window_bounds = array<i64: 64, 32>}, {pipeline_mode = #tpu.pipeline_mode<synchronous>, transform_indices = @transform_13, window_bounds = array<i64: 1, 32>}, {pipeline_mode = #tpu.pipeline_mode<synchronous>, transform_indices = @transform_14, window_bounds = array<i64: 32, 128>}, {pipeline_mode = #tpu.pipeline_mode<synchronous>, transform_indices = @transform_15, window_bounds = array<i64: 1, 128>}, {pipeline_mode = #tpu.pipeline_mode<synchronous>, transform_indices = @transform_16, window_bounds = array<i64: 4, 128>}]} {
    %c0 = arith.constant 0 : index
    %c0_0 = arith.constant 0 : index
    %0 = vector.load %arg2[%c0, %c0_0] : memref<64x16xf32, #tpu.memory_space<vmem>>, vector<64x16xf32>
    %c0_1 = arith.constant 0 : index
    %c0_2 = arith.constant 0 : index
    %1 = vector.load %arg5[%c0_1, %c0_2] : memref<16x32xf32, #tpu.memory_space<vmem>>, vector<16x32xf32>
    %c0_3 = arith.constant 0 : index
    %c0_4 = arith.constant 0 : index
    %2 = vector.load %arg7[%c0_3, %c0_4] : memref<1x32xf32, #tpu.memory_space<vmem>>, vector<1x32xf32>
    %c0_5 = arith.constant 0 : index
    %c0_6 = arith.constant 0 : index
    %c0_7 = arith.constant 0 : index
    %3 = vector.load %arg1[%c0_5, %c0_6, %c0_7] : memref<4x16x16xf32, #tpu.memory_space<vmem>>, vector<1x16x16xf32>
    %4 = vector.shape_cast %3 : vector<1x16x16xf32> to vector<16x16xf32>
    %5 = vector.extract_strided_slice %0 {offsets = [0, 0], sizes = [16, 16], strides = [1, 1]} : vector<64x16xf32> to vector<16x16xf32>
    %cst = arith.constant dense<0.000000e+00> : vector<16x16xf32>
    %6 = tpu.matmul %4, %5, %cst {dimension_numbers = #tpu.dot_dimension_numbers<[1], [0], [0], [1], [0, 0, 1, 1], [], []>} : vector<16x16xf32>, vector<16x16xf32>, vector<16x16xf32> -> vector<16x16xf32>
    %c1 = arith.constant 1 : index
    %c0_8 = arith.constant 0 : index
    %c0_9 = arith.constant 0 : index
    %7 = vector.load %arg1[%c1, %c0_8, %c0_9] : memref<4x16x16xf32, #tpu.memory_space<vmem>>, vector<1x16x16xf32>
    %8 = vector.shape_cast %7 : vector<1x16x16xf32> to vector<16x16xf32>
    %9 = vector.extract_strided_slice %0 {offsets = [16, 0], sizes = [16, 16], strides = [1, 1]} : vector<64x16xf32> to vector<16x16xf32>
    %cst_10 = arith.constant dense<0.000000e+00> : vector<16x16xf32>
    %10 = tpu.matmul %8, %9, %cst_10 {dimension_numbers = #tpu.dot_dimension_numbers<[1], [0], [0], [1], [0, 0, 1, 1], [], []>} : vector<16x16xf32>, vector<16x16xf32>, vector<16x16xf32> -> vector<16x16xf32>
    %c2 = arith.constant 2 : index
    %c0_11 = arith.constant 0 : index
    %c0_12 = arith.constant 0 : index
    %11 = vector.load %arg1[%c2, %c0_11, %c0_12] : memref<4x16x16xf32, #tpu.memory_space<vmem>>, vector<1x16x16xf32>
    %12 = vector.shape_cast %11 : vector<1x16x16xf32> to vector<16x16xf32>
    %13 = vector.extract_strided_slice %0 {offsets = [32, 0], sizes = [16, 16], strides = [1, 1]} : vector<64x16xf32> to vector<16x16xf32>
    %cst_13 = arith.constant dense<0.000000e+00> : vector<16x16xf32>
    %14 = tpu.matmul %12, %13, %cst_13 {dimension_numbers = #tpu.dot_dimension_numbers<[1], [0], [0], [1], [0, 0, 1, 1], [], []>} : vector<16x16xf32>, vector<16x16xf32>, vector<16x16xf32> -> vector<16x16xf32>
    %c3 = arith.constant 3 : index
    %c0_14 = arith.constant 0 : index
    %c0_15 = arith.constant 0 : index
    %15 = vector.load %arg1[%c3, %c0_14, %c0_15] : memref<4x16x16xf32, #tpu.memory_space<vmem>>, vector<1x16x16xf32>
    %16 = vector.shape_cast %15 : vector<1x16x16xf32> to vector<16x16xf32>
    %17 = vector.extract_strided_slice %0 {offsets = [48, 0], sizes = [16, 16], strides = [1, 1]} : vector<64x16xf32> to vector<16x16xf32>
    %cst_16 = arith.constant dense<0.000000e+00> : vector<16x16xf32>
    %18 = tpu.matmul %16, %17, %cst_16 {dimension_numbers = #tpu.dot_dimension_numbers<[1], [0], [0], [1], [0, 0, 1, 1], [], []>} : vector<16x16xf32>, vector<16x16xf32>, vector<16x16xf32> -> vector<16x16xf32>
    %19 = tpu.concatenate %6, %10, %14, %18 in 0 : vector<16x16xf32>, vector<16x16xf32>, vector<16x16xf32>, vector<16x16xf32> -> vector<64x16xf32>
    %cst_17 = arith.constant dense<0.000000e+00> : vector<64x32xf32>
    %20 = tpu.matmul %19, %1, %cst_17 {dimension_numbers = #tpu.dot_dimension_numbers<[1], [0], [0], [1], [0, 0, 1, 1], [], []>} : vector<64x16xf32>, vector<16x32xf32>, vector<64x32xf32> -> vector<64x32xf32>
    %21 = vector.broadcast %2 : vector<1x32xf32> to vector<64x32xf32>
    %22 = arith.addf %20, %21 : vector<64x32xf32>
    %cst_18 = arith.constant 0.000000e+00 : f32
    %23 = vector.broadcast %cst_18 : f32 to vector<64x32xf32>
    %24 = arith.maximumf %22, %23 : vector<64x32xf32>
    %c0_19 = arith.constant 0 : index
    %c0_20 = arith.constant 0 : index
    %25 = vector.load %arg6[%c0_19, %c0_20] : memref<32x32xf32, #tpu.memory_space<vmem>>, vector<32x32xf32>
    %c0_21 = arith.constant 0 : index
    %c0_22 = arith.constant 0 : index
    %26 = vector.load %arg8[%c0_21, %c0_22] : memref<1x32xf32, #tpu.memory_space<vmem>>, vector<1x32xf32>
    %cst_23 = arith.constant dense<0.000000e+00> : vector<64x32xf32>
    %27 = tpu.matmul %24, %25, %cst_23 {dimension_numbers = #tpu.dot_dimension_numbers<[1], [0], [0], [1], [0, 0, 1, 1], [], []>} : vector<64x32xf32>, vector<32x32xf32>, vector<64x32xf32> -> vector<64x32xf32>
    %c0_24 = arith.constant 0 : index
    %c0_25 = arith.constant 0 : index
    %c0_26 = arith.constant 0 : index
    %28 = vector.load %arg1[%c0_24, %c0_25, %c0_26] : memref<4x16x16xf32, #tpu.memory_space<vmem>>, vector<1x16x16xf32>
    %29 = vector.shape_cast %28 : vector<1x16x16xf32> to vector<16x16xf32>
    %30 = vector.extract_strided_slice %27 {offsets = [0, 0], sizes = [16, 32], strides = [1, 1]} : vector<64x32xf32> to vector<16x32xf32>
    %cst_27 = arith.constant dense<0.000000e+00> : vector<16x32xf32>
    %31 = tpu.matmul %29, %30, %cst_27 {dimension_numbers = #tpu.dot_dimension_numbers<[1], [0], [0], [1], [0, 0, 1, 1], [], []>} : vector<16x16xf32>, vector<16x32xf32>, vector<16x32xf32> -> vector<16x32xf32>
    %c1_28 = arith.constant 1 : index
    %c0_29 = arith.constant 0 : index
    %c0_30 = arith.constant 0 : index
    %32 = vector.load %arg1[%c1_28, %c0_29, %c0_30] : memref<4x16x16xf32, #tpu.memory_space<vmem>>, vector<1x16x16xf32>
    %33 = vector.shape_cast %32 : vector<1x16x16xf32> to vector<16x16xf32>
    %34 = vector.extract_strided_slice %27 {offsets = [16, 0], sizes = [16, 32], strides = [1, 1]} : vector<64x32xf32> to vector<16x32xf32>
    %cst_31 = arith.constant dense<0.000000e+00> : vector<16x32xf32>
    %35 = tpu.matmul %33, %34, %cst_31 {dimension_numbers = #tpu.dot_dimension_numbers<[1], [0], [0], [1], [0, 0, 1, 1], [], []>} : vector<16x16xf32>, vector<16x32xf32>, vector<16x32xf32> -> vector<16x32xf32>
    %c2_32 = arith.constant 2 : index
    %c0_33 = arith.constant 0 : index
    %c0_34 = arith.constant 0 : index
    %36 = vector.load %arg1[%c2_32, %c0_33, %c0_34] : memref<4x16x16xf32, #tpu.memory_space<vmem>>, vector<1x16x16xf32>
    %37 = vector.shape_cast %36 : vector<1x16x16xf32> to vector<16x16xf32>
    %38 = vector.extract_strided_slice %27 {offsets = [32, 0], sizes = [16, 32], strides = [1, 1]} : vector<64x32xf32> to vector<16x32xf32>
    %cst_35 = arith.constant dense<0.000000e+00> : vector<16x32xf32>
    %39 = tpu.matmul %37, %38, %cst_35 {dimension_numbers = #tpu.dot_dimension_numbers<[1], [0], [0], [1], [0, 0, 1, 1], [], []>} : vector<16x16xf32>, vector<16x32xf32>, vector<16x32xf32> -> vector<16x32xf32>
    %c3_36 = arith.constant 3 : index
    %c0_37 = arith.constant 0 : index
    %c0_38 = arith.constant 0 : index
    %40 = vector.load %arg1[%c3_36, %c0_37, %c0_38] : memref<4x16x16xf32, #tpu.memory_space<vmem>>, vector<1x16x16xf32>
    %41 = vector.shape_cast %40 : vector<1x16x16xf32> to vector<16x16xf32>
    %42 = vector.extract_strided_slice %27 {offsets = [48, 0], sizes = [16, 32], strides = [1, 1]} : vector<64x32xf32> to vector<16x32xf32>
    %cst_39 = arith.constant dense<0.000000e+00> : vector<16x32xf32>
    %43 = tpu.matmul %41, %42, %cst_39 {dimension_numbers = #tpu.dot_dimension_numbers<[1], [0], [0], [1], [0, 0, 1, 1], [], []>} : vector<16x16xf32>, vector<16x32xf32>, vector<16x32xf32> -> vector<16x32xf32>
    %44 = tpu.concatenate %31, %35, %39, %43 in 0 : vector<16x32xf32>, vector<16x32xf32>, vector<16x32xf32>, vector<16x32xf32> -> vector<64x32xf32>
    %45 = vector.broadcast %26 : vector<1x32xf32> to vector<64x32xf32>
    %46 = arith.addf %44, %45 : vector<64x32xf32>
    %cst_40 = arith.constant 0.000000e+00 : f32
    %47 = vector.broadcast %cst_40 : f32 to vector<64x32xf32>
    %48 = arith.maximumf %46, %47 : vector<64x32xf32>
    %49 = vector.extract_strided_slice %48 {offsets = [0, 0], sizes = [16, 32], strides = [1, 1]} : vector<64x32xf32> to vector<16x32xf32>
    %cst_41 = arith.constant dense<0.000000e+00> : vector<32xf32>
    %50 = vector.multi_reduction <add>, %49, %cst_41 [0] : vector<16x32xf32> to vector<32xf32>
    %51 = vector.shape_cast %50 : vector<32xf32> to vector<1x32xf32>
    %52 = vector.extract_strided_slice %48 {offsets = [16, 0], sizes = [16, 32], strides = [1, 1]} : vector<64x32xf32> to vector<16x32xf32>
    %cst_42 = arith.constant dense<0.000000e+00> : vector<32xf32>
    %53 = vector.multi_reduction <add>, %52, %cst_42 [0] : vector<16x32xf32> to vector<32xf32>
    %54 = vector.shape_cast %53 : vector<32xf32> to vector<1x32xf32>
    %55 = vector.extract_strided_slice %48 {offsets = [32, 0], sizes = [16, 32], strides = [1, 1]} : vector<64x32xf32> to vector<16x32xf32>
    %cst_43 = arith.constant dense<0.000000e+00> : vector<32xf32>
    %56 = vector.multi_reduction <add>, %55, %cst_43 [0] : vector<16x32xf32> to vector<32xf32>
    %57 = vector.shape_cast %56 : vector<32xf32> to vector<1x32xf32>
    %58 = vector.extract_strided_slice %48 {offsets = [48, 0], sizes = [16, 32], strides = [1, 1]} : vector<64x32xf32> to vector<16x32xf32>
    %cst_44 = arith.constant dense<0.000000e+00> : vector<32xf32>
    %59 = vector.multi_reduction <add>, %58, %cst_44 [0] : vector<16x32xf32> to vector<32xf32>
    %60 = vector.shape_cast %59 : vector<32xf32> to vector<1x32xf32>
    %61 = tpu.concatenate %51, %54, %57, %60 in 0 : vector<1x32xf32>, vector<1x32xf32>, vector<1x32xf32>, vector<1x32xf32> -> vector<4x32xf32>
    %c0_45 = arith.constant 0 : index
    %c0_46 = arith.constant 0 : index
    %62 = vector.load %arg4[%c0_45, %c0_46] : memref<64x12xf32, #tpu.memory_space<vmem>>, vector<64x12xf32>
    %c0_47 = arith.constant 0 : index
    %c0_48 = arith.constant 0 : index
    %63 = vector.load %arg9[%c0_47, %c0_48] : memref<12x32xf32, #tpu.memory_space<vmem>>, vector<12x32xf32>
    %c0_49 = arith.constant 0 : index
    %c0_50 = arith.constant 0 : index
    %64 = vector.load %arg11[%c0_49, %c0_50] : memref<1x32xf32, #tpu.memory_space<vmem>>, vector<1x32xf32>
    %c0_51 = arith.constant 0 : index
    %c0_52 = arith.constant 0 : index
    %c0_53 = arith.constant 0 : index
    %65 = vector.load %arg3[%c0_51, %c0_52, %c0_53] : memref<4x16x16xf32, #tpu.memory_space<vmem>>, vector<1x16x16xf32>
    %66 = vector.shape_cast %65 : vector<1x16x16xf32> to vector<16x16xf32>
    %67 = vector.extract_strided_slice %62 {offsets = [0, 0], sizes = [16, 12], strides = [1, 1]} : vector<64x12xf32> to vector<16x12xf32>
    %cst_54 = arith.constant dense<0.000000e+00> : vector<16x12xf32>
    %68 = tpu.matmul %66, %67, %cst_54 {dimension_numbers = #tpu.dot_dimension_numbers<[1], [0], [0], [1], [0, 0, 1, 1], [], []>} : vector<16x16xf32>, vector<16x12xf32>, vector<16x12xf32> -> vector<16x12xf32>
    %c1_55 = arith.constant 1 : index
    %c0_56 = arith.constant 0 : index
    %c0_57 = arith.constant 0 : index
    %69 = vector.load %arg3[%c1_55, %c0_56, %c0_57] : memref<4x16x16xf32, #tpu.memory_space<vmem>>, vector<1x16x16xf32>
    %70 = vector.shape_cast %69 : vector<1x16x16xf32> to vector<16x16xf32>
    %71 = vector.extract_strided_slice %62 {offsets = [16, 0], sizes = [16, 12], strides = [1, 1]} : vector<64x12xf32> to vector<16x12xf32>
    %cst_58 = arith.constant dense<0.000000e+00> : vector<16x12xf32>
    %72 = tpu.matmul %70, %71, %cst_58 {dimension_numbers = #tpu.dot_dimension_numbers<[1], [0], [0], [1], [0, 0, 1, 1], [], []>} : vector<16x16xf32>, vector<16x12xf32>, vector<16x12xf32> -> vector<16x12xf32>
    %c2_59 = arith.constant 2 : index
    %c0_60 = arith.constant 0 : index
    %c0_61 = arith.constant 0 : index
    %73 = vector.load %arg3[%c2_59, %c0_60, %c0_61] : memref<4x16x16xf32, #tpu.memory_space<vmem>>, vector<1x16x16xf32>
    %74 = vector.shape_cast %73 : vector<1x16x16xf32> to vector<16x16xf32>
    %75 = vector.extract_strided_slice %62 {offsets = [32, 0], sizes = [16, 12], strides = [1, 1]} : vector<64x12xf32> to vector<16x12xf32>
    %cst_62 = arith.constant dense<0.000000e+00> : vector<16x12xf32>
    %76 = tpu.matmul %74, %75, %cst_62 {dimension_numbers = #tpu.dot_dimension_numbers<[1], [0], [0], [1], [0, 0, 1, 1], [], []>} : vector<16x16xf32>, vector<16x12xf32>, vector<16x12xf32> -> vector<16x12xf32>
    %c3_63 = arith.constant 3 : index
    %c0_64 = arith.constant 0 : index
    %c0_65 = arith.constant 0 : index
    %77 = vector.load %arg3[%c3_63, %c0_64, %c0_65] : memref<4x16x16xf32, #tpu.memory_space<vmem>>, vector<1x16x16xf32>
    %78 = vector.shape_cast %77 : vector<1x16x16xf32> to vector<16x16xf32>
    %79 = vector.extract_strided_slice %62 {offsets = [48, 0], sizes = [16, 12], strides = [1, 1]} : vector<64x12xf32> to vector<16x12xf32>
    %cst_66 = arith.constant dense<0.000000e+00> : vector<16x12xf32>
    %80 = tpu.matmul %78, %79, %cst_66 {dimension_numbers = #tpu.dot_dimension_numbers<[1], [0], [0], [1], [0, 0, 1, 1], [], []>} : vector<16x16xf32>, vector<16x12xf32>, vector<16x12xf32> -> vector<16x12xf32>
    %81 = tpu.concatenate %68, %72, %76, %80 in 0 : vector<16x12xf32>, vector<16x12xf32>, vector<16x12xf32>, vector<16x12xf32> -> vector<64x12xf32>
    %cst_67 = arith.constant dense<0.000000e+00> : vector<64x32xf32>
    %82 = tpu.matmul %81, %63, %cst_67 {dimension_numbers = #tpu.dot_dimension_numbers<[1], [0], [0], [1], [0, 0, 1, 1], [], []>} : vector<64x12xf32>, vector<12x32xf32>, vector<64x32xf32> -> vector<64x32xf32>
    %83 = vector.broadcast %64 : vector<1x32xf32> to vector<64x32xf32>
    %84 = arith.addf %82, %83 : vector<64x32xf32>
    %cst_68 = arith.constant 0.000000e+00 : f32
    %85 = vector.broadcast %cst_68 : f32 to vector<64x32xf32>
    %86 = arith.maximumf %84, %85 : vector<64x32xf32>
    %c0_69 = arith.constant 0 : index
    %c0_70 = arith.constant 0 : index
    %87 = vector.load %arg10[%c0_69, %c0_70] : memref<32x32xf32, #tpu.memory_space<vmem>>, vector<32x32xf32>
    %c0_71 = arith.constant 0 : index
    %c0_72 = arith.constant 0 : index
    %88 = vector.load %arg12[%c0_71, %c0_72] : memref<1x32xf32, #tpu.memory_space<vmem>>, vector<1x32xf32>
    %cst_73 = arith.constant dense<0.000000e+00> : vector<64x32xf32>
    %89 = tpu.matmul %86, %87, %cst_73 {dimension_numbers = #tpu.dot_dimension_numbers<[1], [0], [0], [1], [0, 0, 1, 1], [], []>} : vector<64x32xf32>, vector<32x32xf32>, vector<64x32xf32> -> vector<64x32xf32>
    %c0_74 = arith.constant 0 : index
    %c0_75 = arith.constant 0 : index
    %c0_76 = arith.constant 0 : index
    %90 = vector.load %arg3[%c0_74, %c0_75, %c0_76] : memref<4x16x16xf32, #tpu.memory_space<vmem>>, vector<1x16x16xf32>
    %91 = vector.shape_cast %90 : vector<1x16x16xf32> to vector<16x16xf32>
    %92 = vector.extract_strided_slice %89 {offsets = [0, 0], sizes = [16, 32], strides = [1, 1]} : vector<64x32xf32> to vector<16x32xf32>
    %cst_77 = arith.constant dense<0.000000e+00> : vector<16x32xf32>
    %93 = tpu.matmul %91, %92, %cst_77 {dimension_numbers = #tpu.dot_dimension_numbers<[1], [0], [0], [1], [0, 0, 1, 1], [], []>} : vector<16x16xf32>, vector<16x32xf32>, vector<16x32xf32> -> vector<16x32xf32>
    %c1_78 = arith.constant 1 : index
    %c0_79 = arith.constant 0 : index
    %c0_80 = arith.constant 0 : index
    %94 = vector.load %arg3[%c1_78, %c0_79, %c0_80] : memref<4x16x16xf32, #tpu.memory_space<vmem>>, vector<1x16x16xf32>
    %95 = vector.shape_cast %94 : vector<1x16x16xf32> to vector<16x16xf32>
    %96 = vector.extract_strided_slice %89 {offsets = [16, 0], sizes = [16, 32], strides = [1, 1]} : vector<64x32xf32> to vector<16x32xf32>
    %cst_81 = arith.constant dense<0.000000e+00> : vector<16x32xf32>
    %97 = tpu.matmul %95, %96, %cst_81 {dimension_numbers = #tpu.dot_dimension_numbers<[1], [0], [0], [1], [0, 0, 1, 1], [], []>} : vector<16x16xf32>, vector<16x32xf32>, vector<16x32xf32> -> vector<16x32xf32>
    %c2_82 = arith.constant 2 : index
    %c0_83 = arith.constant 0 : index
    %c0_84 = arith.constant 0 : index
    %98 = vector.load %arg3[%c2_82, %c0_83, %c0_84] : memref<4x16x16xf32, #tpu.memory_space<vmem>>, vector<1x16x16xf32>
    %99 = vector.shape_cast %98 : vector<1x16x16xf32> to vector<16x16xf32>
    %100 = vector.extract_strided_slice %89 {offsets = [32, 0], sizes = [16, 32], strides = [1, 1]} : vector<64x32xf32> to vector<16x32xf32>
    %cst_85 = arith.constant dense<0.000000e+00> : vector<16x32xf32>
    %101 = tpu.matmul %99, %100, %cst_85 {dimension_numbers = #tpu.dot_dimension_numbers<[1], [0], [0], [1], [0, 0, 1, 1], [], []>} : vector<16x16xf32>, vector<16x32xf32>, vector<16x32xf32> -> vector<16x32xf32>
    %c3_86 = arith.constant 3 : index
    %c0_87 = arith.constant 0 : index
    %c0_88 = arith.constant 0 : index
    %102 = vector.load %arg3[%c3_86, %c0_87, %c0_88] : memref<4x16x16xf32, #tpu.memory_space<vmem>>, vector<1x16x16xf32>
    %103 = vector.shape_cast %102 : vector<1x16x16xf32> to vector<16x16xf32>
    %104 = vector.extract_strided_slice %89 {offsets = [48, 0], sizes = [16, 32], strides = [1, 1]} : vector<64x32xf32> to vector<16x32xf32>
    %cst_89 = arith.constant dense<0.000000e+00> : vector<16x32xf32>
    %105 = tpu.matmul %103, %104, %cst_89 {dimension_numbers = #tpu.dot_dimension_numbers<[1], [0], [0], [1], [0, 0, 1, 1], [], []>} : vector<16x16xf32>, vector<16x32xf32>, vector<16x32xf32> -> vector<16x32xf32>
    %106 = tpu.concatenate %93, %97, %101, %105 in 0 : vector<16x32xf32>, vector<16x32xf32>, vector<16x32xf32>, vector<16x32xf32> -> vector<64x32xf32>
    %107 = vector.broadcast %88 : vector<1x32xf32> to vector<64x32xf32>
    %108 = arith.addf %106, %107 : vector<64x32xf32>
    %cst_90 = arith.constant 0.000000e+00 : f32
    %109 = vector.broadcast %cst_90 : f32 to vector<64x32xf32>
    %110 = arith.maximumf %108, %109 : vector<64x32xf32>
    %111 = vector.extract_strided_slice %110 {offsets = [0, 0], sizes = [16, 32], strides = [1, 1]} : vector<64x32xf32> to vector<16x32xf32>
    %cst_91 = arith.constant dense<0.000000e+00> : vector<32xf32>
    %112 = vector.multi_reduction <add>, %111, %cst_91 [0] : vector<16x32xf32> to vector<32xf32>
    %113 = vector.shape_cast %112 : vector<32xf32> to vector<1x32xf32>
    %114 = vector.extract_strided_slice %110 {offsets = [16, 0], sizes = [16, 32], strides = [1, 1]} : vector<64x32xf32> to vector<16x32xf32>
    %cst_92 = arith.constant dense<0.000000e+00> : vector<32xf32>
    %115 = vector.multi_reduction <add>, %114, %cst_92 [0] : vector<16x32xf32> to vector<32xf32>
    %116 = vector.shape_cast %115 : vector<32xf32> to vector<1x32xf32>
    %117 = vector.extract_strided_slice %110 {offsets = [32, 0], sizes = [16, 32], strides = [1, 1]} : vector<64x32xf32> to vector<16x32xf32>
    %cst_93 = arith.constant dense<0.000000e+00> : vector<32xf32>
    %118 = vector.multi_reduction <add>, %117, %cst_93 [0] : vector<16x32xf32> to vector<32xf32>
    %119 = vector.shape_cast %118 : vector<32xf32> to vector<1x32xf32>
    %120 = vector.extract_strided_slice %110 {offsets = [48, 0], sizes = [16, 32], strides = [1, 1]} : vector<64x32xf32> to vector<16x32xf32>
    %cst_94 = arith.constant dense<0.000000e+00> : vector<32xf32>
    %121 = vector.multi_reduction <add>, %120, %cst_94 [0] : vector<16x32xf32> to vector<32xf32>
    %122 = vector.shape_cast %121 : vector<32xf32> to vector<1x32xf32>
    %123 = tpu.concatenate %113, %116, %119, %122 in 0 : vector<1x32xf32>, vector<1x32xf32>, vector<1x32xf32>, vector<1x32xf32> -> vector<4x32xf32>
    %c0_95 = arith.constant 0 : index
    %c0_96 = arith.constant 0 : index
    %124 = vector.load %arg13[%c0_95, %c0_96] : memref<64x32xf32, #tpu.memory_space<vmem>>, vector<64x32xf32>
    %125 = vector.extract_strided_slice %124 {offsets = [0, 0], sizes = [32, 32], strides = [1, 1]} : vector<64x32xf32> to vector<32x32xf32>
    %cst_97 = arith.constant dense<0.000000e+00> : vector<4x32xf32>
    %126 = tpu.matmul %61, %125, %cst_97 {dimension_numbers = #tpu.dot_dimension_numbers<[1], [0], [0], [1], [0, 0, 1, 1], [], []>} : vector<4x32xf32>, vector<32x32xf32>, vector<4x32xf32> -> vector<4x32xf32>
    %127 = vector.extract_strided_slice %124 {offsets = [32, 0], sizes = [32, 32], strides = [1, 1]} : vector<64x32xf32> to vector<32x32xf32>
    %cst_98 = arith.constant dense<0.000000e+00> : vector<4x32xf32>
    %128 = tpu.matmul %123, %127, %cst_98 {dimension_numbers = #tpu.dot_dimension_numbers<[1], [0], [0], [1], [0, 0, 1, 1], [], []>} : vector<4x32xf32>, vector<32x32xf32>, vector<4x32xf32> -> vector<4x32xf32>
    %129 = arith.addf %126, %128 : vector<4x32xf32>
    %c0_99 = arith.constant 0 : index
    %c0_100 = arith.constant 0 : index
    %130 = vector.load %arg14[%c0_99, %c0_100] : memref<1x32xf32, #tpu.memory_space<vmem>>, vector<1x32xf32>
    %131 = vector.broadcast %130 : vector<1x32xf32> to vector<4x32xf32>
    %132 = arith.addf %129, %131 : vector<4x32xf32>
    %cst_101 = arith.constant 0.000000e+00 : f32
    %133 = vector.broadcast %cst_101 : f32 to vector<4x32xf32>
    %134 = arith.maximumf %132, %133 : vector<4x32xf32>
    %c0_102 = arith.constant 0 : index
    %c0_103 = arith.constant 0 : index
    %135 = vector.load %arg15[%c0_102, %c0_103] : memref<32x128xf32, #tpu.memory_space<vmem>>, vector<32x128xf32>
    %cst_104 = arith.constant dense<0.000000e+00> : vector<4x128xf32>
    %136 = tpu.matmul %134, %135, %cst_104 {dimension_numbers = #tpu.dot_dimension_numbers<[1], [0], [0], [1], [0, 0, 1, 1], [], []>} : vector<4x32xf32>, vector<32x128xf32>, vector<4x128xf32> -> vector<4x128xf32>
    %c0_105 = arith.constant 0 : index
    %c0_106 = arith.constant 0 : index
    %137 = vector.load %arg16[%c0_105, %c0_106] : memref<1x128xf32, #tpu.memory_space<vmem>>, vector<1x128xf32>
    %138 = vector.broadcast %137 : vector<1x128xf32> to vector<4x128xf32>
    %139 = arith.addf %136, %138 : vector<4x128xf32>
    %cst_107 = arith.constant dense<0xFF800000> : vector<4xf32>
    %140 = vector.multi_reduction <maximumf>, %139, %cst_107 [1] : vector<4x128xf32> to vector<4xf32>
    %141 = vector.shape_cast %140 : vector<4xf32> to vector<4x1xf32>
    %142 = vector.broadcast %141 : vector<4x1xf32> to vector<4x128xf32>
    %143 = arith.subf %139, %142 : vector<4x128xf32>
    %144 = math.exp %143 : vector<4x128xf32>
    %cst_108 = arith.constant dense<0.000000e+00> : vector<4xf32>
    %145 = vector.multi_reduction <add>, %144, %cst_108 [1] : vector<4x128xf32> to vector<4xf32>
    %146 = vector.shape_cast %145 : vector<4xf32> to vector<4x1xf32>
    %147 = math.log %146 : vector<4x1xf32>
    %148 = arith.addf %147, %141 : vector<4x1xf32>
    %149 = vector.broadcast %148 : vector<4x1xf32> to vector<4x128xf32>
    %150 = arith.subf %139, %149 : vector<4x128xf32>
    %151 = arith.mulf %61, %61 : vector<4x32xf32>
    %cst_109 = arith.constant dense<0.000000e+00> : vector<4xf32>
    %152 = vector.multi_reduction <add>, %151, %cst_109 [1] : vector<4x32xf32> to vector<4xf32>
    %153 = vector.shape_cast %152 : vector<4xf32> to vector<4x1xf32>
    %154 = math.sqrt %153 : vector<4x1xf32>
    %cst_110 = arith.constant 9.99999996E-13 : f32
    %155 = vector.broadcast %cst_110 : f32 to vector<4x1xf32>
    %156 = arith.maximumf %154, %155 : vector<4x1xf32>
    %157 = vector.broadcast %156 : vector<4x1xf32> to vector<4x32xf32>
    %158 = arith.divf %61, %157 : vector<4x32xf32>
    %159 = arith.mulf %123, %123 : vector<4x32xf32>
    %cst_111 = arith.constant dense<0.000000e+00> : vector<4xf32>
    %160 = vector.multi_reduction <add>, %159, %cst_111 [1] : vector<4x32xf32> to vector<4xf32>
    %161 = vector.shape_cast %160 : vector<4xf32> to vector<4x1xf32>
    %162 = math.sqrt %161 : vector<4x1xf32>
    %cst_112 = arith.constant 9.99999996E-13 : f32
    %163 = vector.broadcast %cst_112 : f32 to vector<4x1xf32>
    %164 = arith.maximumf %162, %163 : vector<4x1xf32>
    %165 = vector.broadcast %164 : vector<4x1xf32> to vector<4x32xf32>
    %166 = arith.divf %123, %165 : vector<4x32xf32>
    %cst_113 = arith.constant dense<0.000000e+00> : vector<4x4xf32>
    %167 = tpu.matmul %158, %166, %cst_113 {dimension_numbers = #tpu.dot_dimension_numbers<[1], [1], [0], [0], [0, 0, 1, 0], [], []>} : vector<4x32xf32>, vector<4x32xf32>, vector<4x4xf32> -> vector<4x4xf32>
    %cst_114 = arith.constant 2.000000e+00 : f32
    %168 = vector.broadcast %cst_114 : f32 to vector<4x4xf32>
    %169 = arith.mulf %167, %168 : vector<4x4xf32>
    %cst_115 = arith.constant dense<0.000000e+00> : vector<4x4xf32>
    %170 = tpu.matmul %166, %158, %cst_115 {dimension_numbers = #tpu.dot_dimension_numbers<[1], [1], [0], [0], [0, 0, 1, 0], [], []>} : vector<4x32xf32>, vector<4x32xf32>, vector<4x4xf32> -> vector<4x4xf32>
    %cst_116 = arith.constant 2.000000e+00 : f32
    %171 = vector.broadcast %cst_116 : f32 to vector<4x4xf32>
    %172 = arith.mulf %170, %171 : vector<4x4xf32>
    %cst_117 = arith.constant dense<0.000000e+00> : vector<4x4xf32>
    %173 = tpu.matmul %158, %158, %cst_117 {dimension_numbers = #tpu.dot_dimension_numbers<[1], [1], [0], [0], [0, 0, 1, 0], [], []>} : vector<4x32xf32>, vector<4x32xf32>, vector<4x4xf32> -> vector<4x4xf32>
    %cst_118 = arith.constant 2.000000e+00 : f32
    %174 = vector.broadcast %cst_118 : f32 to vector<4x4xf32>
    %175 = arith.mulf %173, %174 : vector<4x4xf32>
    %cst_119 = arith.constant dense<0.000000e+00> : vector<4x4xf32>
    %176 = tpu.matmul %166, %166, %cst_119 {dimension_numbers = #tpu.dot_dimension_numbers<[1], [1], [0], [0], [0, 0, 1, 0], [], []>} : vector<4x32xf32>, vector<4x32xf32>, vector<4x4xf32> -> vector<4x4xf32>
    %cst_120 = arith.constant 2.000000e+00 : f32
    %177 = vector.broadcast %cst_120 : f32 to vector<4x4xf32>
    %178 = arith.mulf %176, %177 : vector<4x4xf32>
    %179 = tpu.iota {dimensions = array<i32: 0>} : vector<4x4xi32>
    %180 = tpu.iota {dimensions = array<i32: 1>} : vector<4x4xi32>
    %181 = arith.cmpi eq, %179, %180 : vector<4x4xi32>
    %182 = arith.extui %181 : vector<4x4xi1> to vector<4x4xi32>
    %183 = arith.sitofp %182 : vector<4x4xi32> to vector<4x4xf32>
    %cst_121 = arith.constant 1.000000e+00 : f32
    %184 = vector.broadcast %cst_121 : f32 to vector<4x4xf32>
    %185 = arith.subf %184, %183 : vector<4x4xf32>
    %186 = arith.mulf %175, %185 : vector<4x4xf32>
    %cst_122 = arith.constant 8.000000e-01 : f32
    %187 = vector.broadcast %cst_122 : f32 to vector<4x4xf32>
    %188 = arith.mulf %186, %187 : vector<4x4xf32>
    %189 = arith.mulf %178, %185 : vector<4x4xf32>
    %cst_123 = arith.constant 8.000000e-01 : f32
    %190 = vector.broadcast %cst_123 : f32 to vector<4x4xf32>
    %191 = arith.mulf %189, %190 : vector<4x4xf32>
    %cst_124 = arith.constant dense<0xFF800000> : vector<4xf32>
    %192 = vector.multi_reduction <maximumf>, %169, %cst_124 [1] : vector<4x4xf32> to vector<4xf32>
    %193 = vector.shape_cast %192 : vector<4xf32> to vector<4x1xf32>
    %cst_125 = arith.constant dense<0xFF800000> : vector<4xf32>
    %194 = vector.multi_reduction <maximumf>, %188, %cst_125 [1] : vector<4x4xf32> to vector<4xf32>
    %195 = vector.shape_cast %194 : vector<4xf32> to vector<4x1xf32>
    %196 = arith.maximumf %193, %195 : vector<4x1xf32>
    %197 = vector.broadcast %196 : vector<4x1xf32> to vector<4x4xf32>
    %198 = arith.subf %169, %197 : vector<4x4xf32>
    %199 = math.exp %198 : vector<4x4xf32>
    %cst_126 = arith.constant dense<0.000000e+00> : vector<4xf32>
    %200 = vector.multi_reduction <add>, %199, %cst_126 [1] : vector<4x4xf32> to vector<4xf32>
    %201 = vector.shape_cast %200 : vector<4xf32> to vector<4x1xf32>
    %202 = vector.broadcast %196 : vector<4x1xf32> to vector<4x4xf32>
    %203 = arith.subf %188, %202 : vector<4x4xf32>
    %204 = math.exp %203 : vector<4x4xf32>
    %cst_127 = arith.constant dense<0.000000e+00> : vector<4xf32>
    %205 = vector.multi_reduction <add>, %204, %cst_127 [1] : vector<4x4xf32> to vector<4xf32>
    %206 = vector.shape_cast %205 : vector<4xf32> to vector<4x1xf32>
    %207 = arith.addf %201, %206 : vector<4x1xf32>
    %208 = arith.mulf %169, %183 : vector<4x4xf32>
    %cst_128 = arith.constant dense<0.000000e+00> : vector<4xf32>
    %209 = vector.multi_reduction <add>, %208, %cst_128 [1] : vector<4x4xf32> to vector<4xf32>
    %210 = vector.shape_cast %209 : vector<4xf32> to vector<4x1xf32>
    %211 = math.log %207 : vector<4x1xf32>
    %212 = arith.subf %210, %196 : vector<4x1xf32>
    %213 = arith.subf %211, %212 : vector<4x1xf32>
    %214 = vector.shape_cast %213 : vector<4x1xf32> to vector<1x4x1xf32>
    %cst_129 = arith.constant dense<0.000000e+00> : vector<1xf32>
    %215 = vector.multi_reduction <add>, %214, %cst_129 [1, 2] : vector<1x4x1xf32> to vector<1xf32>
    %216 = vector.shape_cast %215 : vector<1xf32> to vector<1x1x1xf32>
    %217 = vector.extract %216[0, 0, 0] : f32 from vector<1x1x1xf32>
    %cst_130 = arith.constant 4.000000e+00 : f32
    %218 = arith.divf %217, %cst_130 : f32
    %cst_131 = arith.constant dense<0xFF800000> : vector<4xf32>
    %219 = vector.multi_reduction <maximumf>, %172, %cst_131 [1] : vector<4x4xf32> to vector<4xf32>
    %220 = vector.shape_cast %219 : vector<4xf32> to vector<4x1xf32>
    %cst_132 = arith.constant dense<0xFF800000> : vector<4xf32>
    %221 = vector.multi_reduction <maximumf>, %191, %cst_132 [1] : vector<4x4xf32> to vector<4xf32>
    %222 = vector.shape_cast %221 : vector<4xf32> to vector<4x1xf32>
    %223 = arith.maximumf %220, %222 : vector<4x1xf32>
    %224 = vector.broadcast %223 : vector<4x1xf32> to vector<4x4xf32>
    %225 = arith.subf %172, %224 : vector<4x4xf32>
    %226 = math.exp %225 : vector<4x4xf32>
    %cst_133 = arith.constant dense<0.000000e+00> : vector<4xf32>
    %227 = vector.multi_reduction <add>, %226, %cst_133 [1] : vector<4x4xf32> to vector<4xf32>
    %228 = vector.shape_cast %227 : vector<4xf32> to vector<4x1xf32>
    %229 = vector.broadcast %223 : vector<4x1xf32> to vector<4x4xf32>
    %230 = arith.subf %191, %229 : vector<4x4xf32>
    %231 = math.exp %230 : vector<4x4xf32>
    %cst_134 = arith.constant dense<0.000000e+00> : vector<4xf32>
    %232 = vector.multi_reduction <add>, %231, %cst_134 [1] : vector<4x4xf32> to vector<4xf32>
    %233 = vector.shape_cast %232 : vector<4xf32> to vector<4x1xf32>
    %234 = arith.addf %228, %233 : vector<4x1xf32>
    %235 = arith.mulf %172, %183 : vector<4x4xf32>
    %cst_135 = arith.constant dense<0.000000e+00> : vector<4xf32>
    %236 = vector.multi_reduction <add>, %235, %cst_135 [1] : vector<4x4xf32> to vector<4xf32>
    %237 = vector.shape_cast %236 : vector<4xf32> to vector<4x1xf32>
    %238 = math.log %234 : vector<4x1xf32>
    %239 = arith.subf %237, %223 : vector<4x1xf32>
    %240 = arith.subf %238, %239 : vector<4x1xf32>
    %241 = vector.shape_cast %240 : vector<4x1xf32> to vector<1x4x1xf32>
    %cst_136 = arith.constant dense<0.000000e+00> : vector<1xf32>
    %242 = vector.multi_reduction <add>, %241, %cst_136 [1, 2] : vector<1x4x1xf32> to vector<1xf32>
    %243 = vector.shape_cast %242 : vector<1xf32> to vector<1x1x1xf32>
    %244 = vector.extract %243[0, 0, 0] : f32 from vector<1x1x1xf32>
    %cst_137 = arith.constant 4.000000e+00 : f32
    %245 = arith.divf %244, %cst_137 : f32
    %246 = arith.addf %218, %245 : f32
    %cst_138 = arith.constant 5.000000e-01 : f32
    %247 = arith.mulf %cst_138, %246 : f32
    %248 = vector.broadcast %247 : f32 to vector<4x128xf32>
    %249 = arith.addf %150, %248 : vector<4x128xf32>
    %c0_139 = arith.constant 0 : index
    %c0_140 = arith.constant 0 : index
    %250 = vector.load %arg17[%c0_139, %c0_140] : memref<4x128xf32, #tpu.memory_space<vmem>>, vector<4x128xf32>
    tpu.vector_store %arg17[%c0_139, %c0_140], %249 {strides = array<i32>} : memref<4x128xf32, #tpu.memory_space<vmem>>, vector<4x128xf32>,
    return
  }
  func.func @transform_0(%arg0: i32) -> (i32, i32, i32) {
    %c0_i32 = arith.constant 0 : i32
    %c0_i32_0 = arith.constant 0 : i32
    %c0_i32_1 = arith.constant 0 : i32
    %c0_i32_2 = arith.constant 0 : i32
    return %c0_i32, %c0_i32_0, %c0_i32_1 : i32, i32, i32
  }
  func.func @transform_1(%arg0: i32) -> (i32, i32) {
    %c0_i32 = arith.constant 0 : i32
    %c0_i32_0 = arith.constant 0 : i32
    %c0_i32_1 = arith.constant 0 : i32
    return %c0_i32, %c0_i32_0 : i32, i32
  }
  func.func @transform_2(%arg0: i32) -> (i32, i32, i32) {
    %c0_i32 = arith.constant 0 : i32
    %c0_i32_0 = arith.constant 0 : i32
    %c0_i32_1 = arith.constant 0 : i32
    %c0_i32_2 = arith.constant 0 : i32
    return %c0_i32, %c0_i32_0, %c0_i32_1 : i32, i32, i32
  }
  func.func @transform_3(%arg0: i32) -> (i32, i32) {
    %c0_i32 = arith.constant 0 : i32
    %c0_i32_0 = arith.constant 0 : i32
    %c0_i32_1 = arith.constant 0 : i32
    return %c0_i32, %c0_i32_0 : i32, i32
  }
  func.func @transform_4(%arg0: i32) -> (i32, i32) {
    %c0_i32 = arith.constant 0 : i32
    %c0_i32_0 = arith.constant 0 : i32
    %c0_i32_1 = arith.constant 0 : i32
    return %c0_i32, %c0_i32_0 : i32, i32
  }
  func.func @transform_5(%arg0: i32) -> (i32, i32) {
    %c0_i32 = arith.constant 0 : i32
    %c0_i32_0 = arith.constant 0 : i32
    %c0_i32_1 = arith.constant 0 : i32
    return %c0_i32, %c0_i32_0 : i32, i32
  }
  func.func @transform_6(%arg0: i32) -> (i32, i32) {
    %c0_i32 = arith.constant 0 : i32
    %c0_i32_0 = arith.constant 0 : i32
    %c0_i32_1 = arith.constant 0 : i32
    return %c0_i32, %c0_i32_0 : i32, i32
  }
  func.func @transform_7(%arg0: i32) -> (i32, i32) {
    %c0_i32 = arith.constant 0 : i32
    %c0_i32_0 = arith.constant 0 : i32
    %c0_i32_1 = arith.constant 0 : i32
    return %c0_i32, %c0_i32_0 : i32, i32
  }
  func.func @transform_8(%arg0: i32) -> (i32, i32) {
    %c0_i32 = arith.constant 0 : i32
    %c0_i32_0 = arith.constant 0 : i32
    %c0_i32_1 = arith.constant 0 : i32
    return %c0_i32, %c0_i32_0 : i32, i32
  }
  func.func @transform_9(%arg0: i32) -> (i32, i32) {
    %c0_i32 = arith.constant 0 : i32
    %c0_i32_0 = arith.constant 0 : i32
    %c0_i32_1 = arith.constant 0 : i32
    return %c0_i32, %c0_i32_0 : i32, i32
  }
  func.func @transform_10(%arg0: i32) -> (i32, i32) {
    %c0_i32 = arith.constant 0 : i32
    %c0_i32_0 = arith.constant 0 : i32
    %c0_i32_1 = arith.constant 0 : i32
    return %c0_i32, %c0_i32_0 : i32, i32
  }
  func.func @transform_11(%arg0: i32) -> (i32, i32) {
    %c0_i32 = arith.constant 0 : i32
    %c0_i32_0 = arith.constant 0 : i32
    %c0_i32_1 = arith.constant 0 : i32
    return %c0_i32, %c0_i32_0 : i32, i32
  }
  func.func @transform_12(%arg0: i32) -> (i32, i32) {
    %c0_i32 = arith.constant 0 : i32
    %c0_i32_0 = arith.constant 0 : i32
    %c0_i32_1 = arith.constant 0 : i32
    return %c0_i32, %c0_i32_0 : i32, i32
  }
  func.func @transform_13(%arg0: i32) -> (i32, i32) {
    %c0_i32 = arith.constant 0 : i32
    %c0_i32_0 = arith.constant 0 : i32
    %c0_i32_1 = arith.constant 0 : i32
    return %c0_i32, %c0_i32_0 : i32, i32
  }
  func.func @transform_14(%arg0: i32) -> (i32, i32) {
    %c0_i32 = arith.constant 0 : i32
    %c0_i32_0 = arith.constant 0 : i32
    %c0_i32_1 = arith.constant 0 : i32
    return %c0_i32, %c0_i32_0 : i32, i32
  }
  func.func @transform_15(%arg0: i32) -> (i32, i32) {
    %c0_i32 = arith.constant 0 : i32
    %c0_i32_0 = arith.constant 0 : i32
    %c0_i32_1 = arith.constant 0 : i32
    return %c0_i32, %c0_i32_0 : i32, i32
  }
  func.func @transform_16(%arg0: i32) -> (i32, i32) {
    %c0_i32 = arith.constant 0 : i32
    %c0_i32_0 = arith.constant 0 : i32
    %c0_i32_1 = arith.constant 0 : i32
    return %c0_i32, %c0_i32_0 : i32, i32
  }
}

</mosaic_0001>

<bundles_post_ra>
// kernel: gcn_forward.1
= control target key start
LH: loop header
LB: loop body
LE: loop exit
PB: predicated region body
PF: predicated region fallthrough
CT: control target
= control target key end

     0   :  { %s4086_s0 = inlined_call_operand.vmem [shape: f32[4,16,16], index: 0, kind: input, shape index: {}]   ;;  %s4087_s1 = inlined_call_operand.vmem [shape: f32[64,16], index: 1, kind: input, shape index: {}]   ;;  %s4088_s2 = inlined_call_operand.vmem [shape: f32[4,16,16], index: 2, kind: input, shape index: {}]   ;;  %s4089_s3 = inlined_call_operand.vmem [shape: f32[64,12], index: 3, kind: input, shape index: {}]   ;;  %s4090_s4 = inlined_call_operand.vmem [shape: f32[16,32], index: 4, kind: input, shape index: {}]   ;;  %s4091_s5 = inlined_call_operand.vmem [shape: f32[32,32], index: 5, kind: input, shape index: {}]   ;;  %s4092_s6 = inlined_call_operand.vmem [shape: f32[1,32], index: 6, kind: input, shape index: {}]   ;;  %s4093_s7 = inlined_call_operand.vmem [shape: f32[1,32], index: 7, kind: input, shape index: {}]   ;;  %s4094_s8 = inlined_call_operand.hbm [shape: f32[12,32], index: 8, kind: input, shape index: {}]   ;;  %s4095_s9 = inlined_call_operand.vmem [shape: f32[32,32], index: 9, kind: input, shape index: {}]   ;;  %s4096_s10 = inlined_call_operand.hbm [shape: f32[1,32], index: 10, kind: input, shape index: {}]   ;;  %s4097_s11 = inlined_call_operand.hbm [shape: f32[1,32], index: 11, kind: input, shape index: {}]   ;;  %s4098_s12 = inlined_call_operand.vmem [shape: f32[64,32], index: 12, kind: input, shape index: {}]   ;;  %s4099_s13 = inlined_call_operand.hbm [shape: f32[1,32], index: 13, kind: input, shape index: {}]   ;;  %s4100_s14 = inlined_call_operand.vmem [shape: f32[32,128], index: 14, kind: input, shape index: {}]   ;;  %s4101_s15 = inlined_call_operand.hbm [shape: f32[1,128], index: 15, kind: input, shape index: {}]   ;;  %s4102_s16 = inlined_call_operand.hbm [shape: f32[4,128], index: 16, kind: output, shape index: {}]  }
   0x1   :  { %4104 = sst [smem:[#allocation16_spill]] %s4086_s0 }
   0x2   :  { %21 = vsyncpa [#allocation3], 0 }
   0x3   :  { %22 = vsyncpa [#allocation6], 0 }
   0x4   :  { %23 = vsyncpa [#allocation9], 0 }
   0x5   :  { %24 = vsyncpa [#allocation4], 0  ;;  %s3540_s21 = smov [#allocation5]   ;;  %s3541_s23 = smov [#allocation8]  }
   0x6   :  { %s61_s22 = sshll.u32 %s3540_s21, 4  ;;  %s83_s24 = sshll.u32 %s3541_s23, 4  ;;  %s62_s22 = int_to_ptr.vmem [resolvable:$true] %s61_s22  ;;  %s84_s24 = int_to_ptr.vmem [resolvable:$true] %s83_s24 }
   0x7   :  { %s3400_s27 = scalar_lea.hbm %s4096_s10, 16 }
   0x8   :  { %p3401_p0 = scmp.ne.s32.totalorder %s4096_s10, %s3400_s27  ;;  %p3404_p1 = scmp.lt.u32.totalorder %s3400_s27, %s4096_s10 }
   0xa   :  { %p3406_p2 = pnand %p3404_p1, %p3401_p0 }
   0xc   :  { %3409 = shalt.err (!%p3406_p2)
}
   0xd   :  { %s3410_s17 = scalar_lea.vmem %s62_s22, 16  ;;  %s3414_s18 = scalar_lea.vmem %s62_s22, 32 }
   0xe   :  { %p3411_p3 = scmp.ne.s32.totalorder %s62_s22, %s3410_s17  ;;  %p3415_p4 = scmp.lt.s32.totalorder %s62_s22, %s62_s22 }
   0xf   :  { %p3416_p5 = scmp.lt.s32.totalorder %s3414_s18, %s3410_s17 }
  0x11   :  { %p3417_p6 = por %p3416_p5, %p3415_p4 }
  0x13   :  { %p3418_p7 = pnand %p3417_p6, %p3411_p3 }
  0x15   :  { %3421 = shalt.err (!%p3418_p7)
}
  0x16   :  { %64 = dma.hbm_to_vmem [thread:$0]  %s4096_s10, 16, %s62_s22, [#allocation6]  }
  0x17   :  { %s3422_s25 = scalar_lea.hbm %s4099_s13, 16 }
  0x18   :  { %p3423_p8 = scmp.ne.s32.totalorder %s4099_s13, %s3422_s25  ;;  %p3426_p9 = scmp.lt.u32.totalorder %s3422_s25, %s4099_s13 }
  0x1a   :  { %p3428_p10 = pnand %p3426_p9, %p3423_p8 }
  0x1c   :  { %3431 = shalt.err (!%p3428_p10)
}
  0x1d   :  { %s3432_s30 = scalar_lea.vmem %s84_s24, 16  ;;  %s3436_s0 = scalar_lea.vmem %s84_s24, 32 }
  0x1e   :  { %p3433_p11 = scmp.ne.s32.totalorder %s84_s24, %s3432_s30  ;;  %p3437_p12 = scmp.lt.s32.totalorder %s84_s24, %s84_s24 }
  0x1f   :  { %p3438_p13 = scmp.lt.s32.totalorder %s3436_s0, %s3432_s30 }
  0x21   :  { %p3439_p0 = por %p3438_p13, %p3437_p12 }
  0x23   :  { %p3440_p1 = pnand %p3439_p0, %p3433_p11 }
  0x25   :  { %3443 = shalt.err (!%p3440_p1)
}
  0x26   :  { %86 = dma.hbm_to_vmem [thread:$0]  %s4099_s13, 16, %s84_s24, [#allocation9]  }
  0x27   :  { %s3542_s17 = smov [#allocation2]   ;;  %s3444_s21 = scalar_lea.hbm %s4094_s8, 256 }
  0x28   :  { %s46_s18 = sshll.u32 %s3542_s17, 4  ;;  %p3445_p2 = scmp.ne.s32.totalorder %s4094_s8, %s3444_s21  ;;  %s47_s18 = int_to_ptr.vmem [resolvable:$true] %s46_s18 }
  0x29   :  { %p3448_p3 = scmp.lt.u32.totalorder %s3444_s21, %s4094_s8 }
  0x2b   :  { %p3450_p4 = pnand %p3448_p3, %p3445_p2 }
  0x2d   :  { %3453 = shalt.err (!%p3450_p4)
}
  0x2e   :  { %s3454_s28 = scalar_lea.vmem %s47_s18, 256  ;;  %p3459_p6 = scmp.lt.s32.totalorder %s47_s18, %s47_s18 }
  0x2f   :  { %p3455_p5 = scmp.ne.s32.totalorder %s47_s18, %s3454_s28  ;;  %p3460_p7 = scmp.lt.s32.totalorder %s3454_s28, %s3454_s28 }
  0x31   :  { %p3461_p8 = por %p3460_p7, %p3459_p6 }
  0x33   :  { %p3462_p9 = pnand %p3461_p8, %p3455_p5 }
  0x35   :  { %3465 = shalt.err (!%p3462_p9)
}
  0x36   :  { %s3543_s13 = smov 128   ;;  %s3544_s24 = smov 8  }
  0x37   :  { %52 = dma.hbm_to_vmem [thread:$0]  %s4094_s8, 256, %s47_s18, [#allocation3], %s3543_s13, %s3543_s13, %s3544_s24  }
  0x38   :  { %s3545_s0 = smov [#allocation7]   ;;  %s3546_s22 = smov [#allocation10]  }
  0x39   :  { %s71_s10 = sshll.u32 %s3545_s0, 4  ;;  %s95_s17 = sshll.u32 %s3546_s22, 4  ;;  %s72_s10 = int_to_ptr.vmem [resolvable:$true] %s71_s10  ;;  %s96_s17 = int_to_ptr.vmem [resolvable:$true] %s95_s17 }
  0x3a   :  { %s3466_s21 = scalar_lea.hbm %s4097_s11, 16 }
  0x3b   :  { %p3467_p10 = scmp.ne.s32.totalorder %s4097_s11, %s3466_s21  ;;  %p3470_p11 = scmp.lt.u32.totalorder %s3466_s21, %s4097_s11 }
  0x3d   :  { %p3472_p12 = pnand %p3470_p11, %p3467_p10 }
  0x3f   :  { %3475 = shalt.err (!%p3472_p12)
}
  0x40   :  { %s3476_s8 = scalar_lea.vmem %s72_s10, 16  ;;  %s3480_s18 = scalar_lea.vmem %s72_s10, 32 }
  0x41   :  { %p3477_p13 = scmp.ne.s32.totalorder %s72_s10, %s3476_s8  ;;  %p3481_p0 = scmp.lt.s32.totalorder %s72_s10, %s72_s10 }
  0x42   :  { %p3482_p1 = scmp.lt.s32.totalorder %s3480_s18, %s3476_s8 }
  0x44   :  { %p3483_p2 = por %p3482_p1, %p3481_p0 }
  0x46   :  { %p3484_p3 = pnand %p3483_p2, %p3477_p13 }
  0x48   :  { %3487 = shalt.err (!%p3484_p3)
}
  0x49   :  { %74 = dma.hbm_to_vmem [thread:$0]  %s4097_s11, 16, %s72_s10, [#allocation6]  }
  0x4a   :  { %s3488_s30 = scalar_lea.hbm %s4101_s15, 16 }
  0x4b   :  { %p3489_p4 = scmp.ne.s32.totalorder %s4101_s15, %s3488_s30  ;;  %p3492_p5 = scmp.lt.u32.totalorder %s3488_s30, %s4101_s15 }
  0x4d   :  { %p3494_p6 = pnand %p3492_p5, %p3489_p4 }
  0x4f   :  { %3497 = shalt.err (!%p3494_p6)
}
  0x50   :  { %s3498_s21 = scalar_lea.vmem %s96_s17, 16  ;;  %s3502_s23 = scalar_lea.vmem %s96_s17, 32 }
  0x51   :  { %p3499_p7 = scmp.ne.s32.totalorder %s96_s17, %s3498_s21  ;;  %p3503_p8 = scmp.lt.s32.totalorder %s96_s17, %s96_s17 }
  0x52   :  { %p3504_p9 = scmp.lt.s32.totalorder %s3502_s23, %s3498_s21 }
  0x54   :  { %p3505_p10 = por %p3504_p9, %p3503_p8 }
  0x56   :  { %p3506_p11 = pnand %p3505_p10, %p3499_p7 }
  0x58   :  { %3509 = shalt.err (!%p3506_p11)
}
  0x59   :  { %98 = dma.hbm_to_vmem [thread:$0]  %s4101_s15, 16, %s96_s17, [#allocation9]  }
  0x5a   :  { %3532 = dma.done.wait [#allocation3], 256  }
  0x5b   :  { %3533 = vsyncadd [#allocation3], 4294967040 }
  0x5c   :  { %3534 = dma.done.wait [#allocation6], 32  }
  0x5d   :  { %3535 = vsyncadd [#allocation6], 4294967264 }
  0x5e   :  { %3536 = dma.done.wait [#allocation9], 32  }
  0x5f   :  { %3537 = vsyncadd [#allocation9], 4294967264  ;;  %vm127_vm0 = vcmask 130048   ;;  %v114_v0 = vld [vmem:[%s4087_s1] sm:$0xff]  ;;  %v115_v1 = vld [vmem:[%s4087_s1 + $0x8] sm:$0xff]  ;;  %s4105_s13 = sld [smem:[#allocation16_spill]] }
  0x60   :  { %v3252_v3 = vpack.c.bf16 %v115_v1, %v114_v0  ;;  %v116_v4 = vld [vmem:[%s4087_s1 + $0x10] sm:$0xff]  ;;  %v117_v5 = vld [vmem:[%s4087_s1 + $0x18] sm:$0xff]  ;;  %v118_v8 = vld [vmem:[%s4087_s1 + $0x20] sm:$0xff]  ;;  %vm609_vm1 = vcmask 261120   ;;  %vm1480_vm2 = vcmask 1043456   ;;  %vm3547_vm3 = vmmov 1  }
  0x61   :  { %v3256_v6 = vpack.c.bf16 %v117_v5, %v116_v4  ;;  %v119_v9 = vld [vmem:[%s4087_s1 + $0x28] sm:$0xff]  ;;  %v120_v12 = vld [vmem:[%s4087_s1 + $0x30] sm:$0xff]  ;;  %v121_v13 = vld [vmem:[%s4087_s1 + $0x38] sm:$0xff]  ;;  %vm1455_vm5 = vcmask 97280   ;;  %vm1097_vm6 = vcmask 1040384   ;;  %vm1099_vm7 = vcmask 1041408  }
  0x62   :  { %3253 = vmatprep.subr.bf16.mxu0 %v3252_v3  ;;  %v3260_v11 = vpack.c.bf16 %v119_v9, %v118_v8  ;;  %v3264_v15 = vpack.c.bf16 %v121_v13, %v120_v12  ;;  %v122_v16 = vld [vmem:[%s4090_s4] sm:$0xff]  ;;  %v123_v17 = vld [vmem:[%s4090_s4 + $0x8] sm:$0xff]  ;;  %v606_v34 = vld [vmem:[%s4091_s5 + $0x10] sm:$0xff]  ;;  %vm1101_vm8 = vcmask 1042432   ;;  %vm3549_vm9 = vmmov 0  }
  0x63   :  { %3255 = vmatpush3.bf16.msra.mxu0 %v3252_v3  ;;  %3257 = vmatprep.subr.bf16.mxu1 %v3256_v6  ;;  %v3268_v19 = vpack.c.bf16 %v123_v17, %v122_v16  ;;  %v604_v23 = vld [vmem:[%s4091_s5] sm:$0xff]  ;;  %v605_v24 = vld [vmem:[%s4091_s5 + $0x8] sm:$0xff]  ;;  %v607_v35 = vld [vmem:[%s4091_s5 + $0x18] sm:$0xff]  ;;  %vm2353_vm10 = vcmask 257024   ;;  %vm2683_vm15 = vcmask 27648  }
  0x64   :  { %3259 = vmatpush3.bf16.msra.mxu1 %v3256_v6  ;;  %3261 = vmatprep.subr.bf16.mxu0 %v3260_v11  ;;  %v3272_v25 = vpack.c.bf16 %v605_v24, %v604_v23  ;;  %v3276_v36 = vpack.c.bf16 %v607_v35, %v606_v34  ;;  %v2803_v37 = vld [vmem:[%s4092_s6] ss:$0 sm:$0xff]  ;;  %v1104_v5 = vld [vmem:[%s4089_s3 + $0x8] sm:$0xff]  ;;  %v1105_v12 = vld [vmem:[%s4089_s3 + $0x10] sm:$0xff] }
  0x65   :  { %v125_v2 = vld [vmem:[%s4105_s13] sm:$0xff]  ;;  %v3716_v7 = vld [vmem:[%s4105_s13 + $0x10] sm:$0xff]  ;;  %v3729_v10 = vld [vmem:[%s4105_s13 + $0x8] sm:$0xff]  ;;  %3265 = vmatprep.subr.bf16.mxu1 %v3264_v15 }
  0x66   :  { %3019 = vmatprep.mubr.msk.f32.mxu0 %vm127_vm0, %v125_v2  ;;  %3026 = vmatprep.mubr.msk.f32.mxu1 %vm127_vm0, %v3716_v7  ;;  %v3740_v14 = vld [vmem:[%s4105_s13 + $0x18] sm:$0xff]  ;;  %v3751_v18 = vld [vmem:[%s4105_s13 + $0x20] sm:$0xff]  ;;  %v3758_v20 = vld [vmem:[%s4105_s13 + $0x30] sm:$0xff] }
  0x67   :  { %3020 = vmatmul.mubr.msk.f32.vlgmr.msra.gmra.mrb[0].mxu0 %vm127_vm0, %v3729_v10  ;;  %3027 = vmatmul.mubr.msk.f32.vlgmr.msra.gmra.mrb[0].mxu1 %vm127_vm0, %v3740_v14  ;;  %v3765_v21 = vld [vmem:[%s4105_s13 + $0x28] sm:$0xff]  ;;  %v3772_v22 = vld [vmem:[%s4105_s13 + $0x38] sm:$0xff]  ;;  %v1103_v4 = vld [vmem:[%s4089_s3] sm:$0xff] }
  0x68   :  { %3263 = vmatpush3.bf16.msra.mxu0 %v3260_v11  ;;  %3033 = vmatprep.mubr.msk.f32.mxu0 %vm127_vm0, %v3751_v18  ;;  %v3296_v11 = vpack.c.bf16 %v1104_v5, %v1103_v4  ;;  %v1106_v13 = vld [vmem:[%s4089_s3 + $0x18] sm:$0xff]  ;;  %v1109_v23 = vld [vmem:[%s4089_s3 + $0x30] sm:$0xff]  ;;  %v3856_v24 = vld [vmem:[%s4088_s2 + $0x8] sm:$0xff] }
  0x69   :  { %3267 = vmatpush3.bf16.msra.mxu1 %v3264_v15  ;;  %3040 = vmatprep.mubr.msk.f32.mxu1 %vm127_vm0, %v3758_v20  ;;  %vm3313_vm4 = vmpackc.low %vm1480_vm2, %vm3547_vm3  ;;  %v1598_v34 = vld [vmem:[%s4095_s9 + $0x8] sm:$0xff] }
  0x6a   :  { %3269 = vmatprep.subr.bf16.mxu0 %v3268_v19  ;;  %3273 = vmatprep.subr.bf16.mxu1 %v3272_v25 }
  0x6b   :  { %3034 = vmatmul.mubr.msk.f32.vlgmr.msra.gmra.mrb[2].mxu0 %vm127_vm0, %v3765_v21 }
  0x6c   :  { %3041 = vmatmul.mubr.msk.f32.vlgmr.msra.gmra.mrb[2].mxu1 %vm127_vm0, %v3772_v22  ;;  %3271 = vmatpush3.bf16.msra.mxu0 %v3268_v19 }
  0x6d   :  { %3275 = vmatpush3.bf16.msra.mxu1 %v3272_v25  ;;  %v3868_v25 = vld [vmem:[%s4088_s2 + $0x20] sm:$0xff] }
  0x6e   :  { %3277 = vmatprep.subr.bf16.mxu1 %v3276_v36 }
  0x71   :  { %3279 = vmatpush3.bf16.msra.mxu1 %v3276_v36  ;;  %v2828_v36 = vld [vmem:[%s4093_s7] ss:$0 sm:$0xff] }
 0x13a   :  { %v3021_v26 = vpop.f32.mrb[0].mxu0  ;;  %v3028_v28 = vpop.f32.mrb[0].mxu1 }
 0x13b   :  { %v200_v27 = vpop.f32.mrb[1].mxu0  ;;  %v284_v29 = vpop.f32.mrb[1].mxu1 }
 0x13c   :  { %3047 = vmatprep.mubr.msk.f32.mxu0 %vm127_vm0, %v200_v27  ;;  %v3879_v27 = vld [vmem:[%s4088_s2 + $0x18] sm:$0xff] }
 0x13d   :  { %3048 = vmatmul.mubr.msk.f32.vlgmr.msra.gmra.mrb[4].mxu0 %vm127_vm0, %v3021_v26 }
 0x13e   :  { %3050 = vmatprep.mubr.msk.f32.mxu0 %vm127_vm0, %v284_v29  ;;  %v3035_v30 = vpop.f32.mrb[2].mxu0  ;;  %v3900_v29 = vld [vmem:[%s4088_s2 + $0x38] sm:$0xff] }
 0x13f   :  { %v368_v31 = vpop.f32.mrb[3].mxu0  ;;  %v3042_v32 = vpop.f32.mrb[2].mxu1 }
 0x140   :  { %v452_v33 = vpop.f32.mrb[3].mxu1 }
 0x141   :  { %3051 = vmatmul.mubr.msk.f32.gmra.mrb[6].mxu0 %vm127_vm0, %v3028_v28  ;;  %v3891_v28 = vld [vmem:[%s4088_s2 + $0x30] sm:$0xff] }
 0x142   :  { %3053 = vmatprep.mubr.msk.f32.mxu0 %vm127_vm0, %v368_v31  ;;  %v1112_v31 = vld [vmem:[#allocation2 + $0x8] sm:$0xf] }
 0x145   :  { %3054 = vmatmul.mubr.msk.f32.gmra.mrb[8].mxu0 %vm127_vm0, %v3035_v30  ;;  %v1111_v30 = vld [vmem:[#allocation2] sm:$0xff] }
 0x146   :  { %3056 = vmatprep.mubr.msk.f32.mxu0 %vm127_vm0, %v452_v33  ;;  %v1597_v33 = vld [vmem:[%s4095_s9] sm:$0xff] }
 0x147   :  { %v3318_v35 = vpack.c.bf16 %v1598_v34, %v1597_v33 }
 0x149   :  { %3057 = vmatmul.mubr.msk.f32.gmra.mrb[10].mxu0 %vm127_vm0, %v3042_v32  ;;  %v3312_v32 = vpack.c.bf16 %v1112_v31, %v1111_v30 }
 0x14a   :  { %3083 = vmatprep.mubr.msk.f32.mxu0 %vm127_vm0, %v125_v2 }
 0x210   :  { %v3049_v38 = vpop.f32.mrb[4].mxu0 }
 0x211   :  { %v563_v39 = vadd.f32 %v3049_v38, %v2803_v37  ;;  %v557_v40 = vpop.f32.mrb[5].mxu0 }
 0x212   :  { %v558_v41 = vadd.f32 %v2803_v37, %v557_v40 }
 0x213   :  { %v597_v44 = vmax.f32 %v563_v39, 0.0 }
 0x214   :  { %v596_v42 = vmax.f32 %v558_v41, 0.0  ;;  %v3052_v43 = vpop.f32.mrb[6].mxu0 }
 0x215   :  { %v573_v45 = vadd.f32 %v3052_v43, %v2803_v37  ;;  %v567_v46 = vpop.f32.mrb[7].mxu0 }
 0x216   :  { %v568_v47 = vadd.f32 %v2803_v37, %v567_v46  ;;  %3067 = vmatprep.mubr.msk.f32.mxu1 %vm609_vm1, %v596_v42 }
 0x217   :  { %3068 = vmatmul.mubr.msk.f32.vlgmr.msra.gmra.mrb[4].mxu1 %vm609_vm1, %v597_v44  ;;  %v599_v50 = vmax.f32 %v573_v45, 0.0 }
 0x218   :  { %v598_v48 = vmax.f32 %v568_v47, 0.0  ;;  %v3055_v49 = vpop.f32.mrb[8].mxu0 }
 0x219   :  { %v583_v51 = vadd.f32 %v3055_v49, %v2803_v37  ;;  %v577_v52 = vpop.f32.mrb[9].mxu0 }
 0x21a   :  { %v578_v53 = vadd.f32 %v2803_v37, %v577_v52  ;;  %3070 = vmatprep.mubr.msk.f32.mxu1 %vm609_vm1, %v598_v48 }
 0x21b   :  { %3071 = vmatmul.mubr.msk.f32.gmra.mrb[6].mxu1 %vm609_vm1, %v599_v50  ;;  %v601_v56 = vmax.f32 %v583_v51, 0.0 }
 0x21c   :  { %v600_v54 = vmax.f32 %v578_v53, 0.0  ;;  %v3058_v55 = vpop.f32.mrb[10].mxu0 }
 0x21d   :  { %v593_v57 = vadd.f32 %v3058_v55, %v2803_v37  ;;  %v587_v58 = vpop.f32.mrb[11].mxu0 }
 0x21e   :  { %v588_v59 = vadd.f32 %v2803_v37, %v587_v58  ;;  %3073 = vmatprep.mubr.msk.f32.mxu1 %vm609_vm1, %v600_v54 }
 0x21f   :  { %3074 = vmatmul.mubr.msk.f32.gmra.mrb[8].mxu1 %vm609_vm1, %v601_v56  ;;  %v603_v61 = vmax.f32 %v593_v57, 0.0 }
 0x220   :  { %v602_v60 = vmax.f32 %v588_v59, 0.0 }
 0x222   :  { %3076 = vmatprep.mubr.msk.f32.mxu1 %vm609_vm1, %v602_v60 }
 0x223   :  { %3077 = vmatmul.mubr.msk.f32.gmra.mrb[10].mxu1 %vm609_vm1, %v603_v61 }
 0x224   :  { %3097 = vmatprep.mubr.msk.f32.mxu1 %vm127_vm0, %v3751_v18  ;;  %v3300_v18 = vpack.c.bf16 %v1106_v13, %v1105_v12 }
 0x2ea   :  { %v3069_v62 = vpop.f32.mrb[4].mxu1 }
 0x2eb   :  { %v700_v63 = vpop.f32.mrb[5].mxu1 }
 0x2ec   :  { %v3280_v0 = vpack.c.bf16 %v3069_v62, %v700_v63 }
 0x2ee   :  { %v3072_v1 = vpop.f32.mrb[6].mxu1  ;;  %3281 = vmatprep.subr.bf16.mxu0 %v3280_v0 }
 0x2ef   :  { %v710_v2 = vpop.f32.mrb[7].mxu1  ;;  %3283 = vmatpush3.bf16.msra.mxu0 %v3280_v0 }
 0x2f0   :  { %v3284_v3 = vpack.c.bf16 %v3072_v1, %v710_v2 }
 0x2f2   :  { %v3075_v6 = vpop.f32.mrb[8].mxu1  ;;  %3084 = vmatmul.mubr.msk.f32.vlgmr.msra.gmra.mrb[12].mxu0 %vm127_vm0, %v3729_v10  ;;  %3285 = vmatprep.subr.bf16.mxu0 %v3284_v3  ;;  %v1107_v10 = vld [vmem:[%s4089_s3 + $0x20] sm:$0xff] }
 0x2f3   :  { %v720_v8 = vpop.f32.mrb[9].mxu1  ;;  %3287 = vmatpush3.bf16.msra.mxu0 %v3284_v3  ;;  %3090 = vmatprep.mubr.msk.f32.mxu0 %vm127_vm0, %v3716_v7  ;;  %v1108_v7 = vld [vmem:[%s4089_s3 + $0x28] sm:$0xff] }
 0x2f4   :  { %v3288_v9 = vpack.c.bf16 %v3075_v6, %v720_v8  ;;  %v3304_v19 = vpack.c.bf16 %v1108_v7, %v1107_v10 }
 0x2f6   :  { %v3078_v15 = vpop.f32.mrb[10].mxu1  ;;  %3091 = vmatmul.mubr.msk.f32.vlgmr.msra.gmra.mrb[14].mxu0 %vm127_vm0, %v3740_v14  ;;  %3289 = vmatprep.subr.bf16.mxu1 %v3288_v9  ;;  %v3843_v14 = vld [vmem:[%s4088_s2] sm:$0xff] }
 0x2f7   :  { %v730_v16 = vpop.f32.mrb[11].mxu1  ;;  %3291 = vmatpush3.bf16.msra.mxu1 %v3288_v9  ;;  %3104 = vmatprep.mubr.msk.f32.mxu0 %vm127_vm0, %v3758_v20  ;;  %v1110_v20 = vld [vmem:[%s4089_s3 + $0x38] sm:$0xff] }
 0x2f8   :  { %v3292_v17 = vpack.c.bf16 %v3078_v15, %v730_v16  ;;  %3297 = vmatprep.subr.bf16.mxu1 %v3296_v11  ;;  %v3308_v26 = vpack.c.bf16 %v1110_v20, %v1109_v23 }
 0x2fa   :  { %3098 = vmatmul.mubr.msk.f32.vlgmr.msra.gmra.mrb[12].mxu1 %vm127_vm0, %v3765_v21  ;;  %3293 = vmatprep.subr.bf16.mxu0 %v3292_v17  ;;  %v3863_v21 = vld [vmem:[%s4088_s2 + $0x10] sm:$0xff] }
 0x2fb   :  { %3295 = vmatpush3.bf16.msra.mxu0 %v3292_v17  ;;  %3299 = vmatpush3.bf16.msra.mxu1 %v3296_v11 }
 0x2fc   :  { %3111 = vmatprep.mubr.msk.f32.mxu1 %vm127_vm0, %v3843_v14  ;;  %3301 = vmatprep.subr.bf16.mxu0 %v3300_v18 }
 0x2fd   :  { %3305 = vmatprep.subr.bf16.mxu1 %v3304_v19 }
 0x2fe   :  { %3105 = vmatmul.mubr.msk.f32.vlgmr.msra.gmra.mrb[16].mxu0 %vm127_vm0, %v3772_v22  ;;  %3112 = vmatmul.mubr.msk.f32.vlgmr.msra.gmra.mrb[14].mxu1 %vm127_vm0, %v3856_v24  ;;  %v3886_v22 = vld [vmem:[%s4088_s2 + $0x28] sm:$0xff] }
 0x2ff   :  { %3303 = vmatpush3.bf16.msra.mxu0 %v3300_v18  ;;  %3118 = vmatprep.mubr.msk.f32.mxu0 %vm127_vm0, %v3863_v21 }
 0x300   :  { %3307 = vmatpush3.bf16.msra.mxu1 %v3304_v19  ;;  %3125 = vmatprep.mubr.msk.f32.mxu1 %vm127_vm0, %v3868_v25 }
 0x301   :  { %3309 = vmatprep.subr.bf16.mxu0 %v3308_v26  ;;  %3314 = vmatprep.subr.msk.bf16.mxu1 %vm3313_vm4, %v3312_v32 }
 0x302   :  { %3119 = vmatmul.mubr.msk.f32.vlgmr.msra.gmra.mrb[18].mxu0 %vm127_vm0, %v3879_v27 }
 0x303   :  { %3126 = vmatmul.mubr.msk.f32.vlgmr.msra.gmra.mrb[16].mxu1 %vm127_vm0, %v3886_v22  ;;  %3311 = vmatpush3.bf16.msra.mxu0 %v3308_v26 }
 0x304   :  { %3132 = vmatprep.mubr.msk.f32.mxu0 %vm127_vm0, %v3891_v28  ;;  %3317 = vmatpush3.bf16.msk.msra.mxu1 %vm3313_vm4, %v3312_v32 }
 0x305   :  { %3319 = vmatprep.subr.bf16.mxu0 %v3318_v35 }
 0x306   :  { %3133 = vmatmul.mubr.msk.f32.vlgmr.msra.gmra.mrb[20].mxu0 %vm127_vm0, %v3900_v29 }
 0x307   :  { %3321 = vmatpush3.bf16.msra.mxu0 %v3318_v35 }
 0x3c5   :  { %v3085_v37 = vpop.f32.mrb[12].mxu0 }
 0x3c6   :  { %v1046_v38 = vadd.f32 %v3085_v37, %v2828_v36  ;;  %v805_v39 = vpop.f32.mrb[13].mxu0 }
 0x3c7   :  { %v1045_v40 = vadd.f32 %v2828_v36, %v805_v39 }
 0x3c8   :  { %v1054_v41 = vmax.f32 %v1046_v38, 0.0 }
 0x3c9   :  { %v1053_v42 = vmax.f32 %v1045_v40, 0.0  ;;  %v3092_v43 = vpop.f32.mrb[14].mxu0 }
 0x3ca   :  { %v1062_v44 = vsel %vm609_vm1, %v1054_v41, 0.0  ;;  %v1048_v45 = vadd.f32 %v3092_v43, %v2828_v36  ;;  %v880_v46 = vpop.f32.mrb[15].mxu0 }
 0x3cb   :  { %v1061_v47 = vsel %vm609_vm1, %v1053_v42, 0.0  ;;  %v1047_v48 = vadd.f32 %v2828_v36, %v880_v46 }
 0x3cc   :  { %v1063_v49 = vadd.f32 %v1062_v44, %v1061_v47  ;;  %v1056_v50 = vmax.f32 %v1048_v45, 0.0 }
 0x3cd   :  { %v1055_v51 = vmax.f32 %v1047_v48, 0.0  ;;  %v3099_v52 = vpop.f32.mrb[12].mxu1 }
 0x3ce   :  { %v1064_v53 = vrot.slane %v1063_v49, 4  ;;  %v1071_v54 = vsel %vm609_vm1, %v1056_v50, 0.0  ;;  %v1050_v55 = vadd.f32 %v3099_v52, %v2828_v36  ;;  %v955_v56 = vpop.f32.mrb[13].mxu1  ;;  %v1599_v52 = vld [vmem:[%s4095_s9 + $0x10] sm:$0xff] }
 0x3cf   :  { %v1070_v57 = vsel %vm609_vm1, %v1055_v51, 0.0  ;;  %v1049_v58 = vadd.f32 %v2828_v36, %v955_v56 }
 0x3d0   :  { %v1065_v59 = vadd.f32 %v1064_v53, %v1063_v49  ;;  %v1072_v60 = vadd.f32 %v1071_v54, %v1070_v57  ;;  %v1058_v61 = vmax.f32 %v1050_v55, 0.0  ;;  %v1600_v53 = vld [vmem:[%s4095_s9 + $0x18] sm:$0xff]  ;;  %s3551_s9 = smov [#allocation11]  }
 0x3d1   :  { %v1057_v62 = vmax.f32 %v1049_v58, 0.0  ;;  %v3106_v63 = vpop.f32.mrb[16].mxu0  ;;  %v3113_v0 = vpop.f32.mrb[14].mxu1  ;;  %v3322_v54 = vpack.c.bf16 %v1600_v53, %v1599_v52  ;;  %s2778_s23 = sshll.u32 %s3551_s9, 4  ;;  %s2779_s23 = int_to_ptr.vmem [resolvable:$true] %s2778_s23 }
 0x3d2   :  { %v1066_v1 = vrot.slane %v1065_v59, 2  ;;  %v1073_v2 = vrot.slane %v1072_v60, 4  ;;  %v1080_v3 = vsel %vm609_vm1, %v1058_v61, 0.0  ;;  %v1052_v4 = vadd.f32 %v3106_v63, %v2828_v36  ;;  %v1030_v5 = vpop.f32.mrb[17].mxu0  ;;  %v1188_v6 = vpop.f32.mrb[15].mxu1  ;;  %s3510_s11 = scalar_lea.vmem %s2779_s23, 64  ;;  %p3515_p13 = scmp.lt.s32.totalorder %s2779_s23, %s2779_s23 }
 0x3d3   :  { %v1079_v8 = vsel %vm609_vm1, %v1057_v62, 0.0  ;;  %v1051_v9 = vadd.f32 %v2828_v36, %v1030_v5  ;;  %3139 = vmatprep.mubr.msk.f32.mxu1 %vm1455_vm5, %v1188_v6  ;;  %3323 = vmatprep.subr.bf16.mxu0 %v3322_v54  ;;  %p3511_p12 = scmp.ne.s32.totalorder %s2779_s23, %s3510_s11  ;;  %p3516_p0 = scmp.lt.s32.totalorder %s3510_s11, %s3510_s11 }
 0x3d4   :  { %v1067_v11 = vadd.f32 %v1066_v1, %v1065_v59  ;;  %v1074_v12 = vadd.f32 %v1073_v2, %v1072_v60  ;;  %v1081_v13 = vadd.f32 %v1080_v3, %v1079_v8  ;;  %v1060_v15 = vmax.f32 %v1052_v4, 0.0  ;;  %3140 = vmatmul.mubr.msk.f32.vlgmr.msra.gmra.mrb[18].mxu1 %vm1455_vm5, %v3113_v0  ;;  %3325 = vmatpush3.bf16.msra.mxu0 %v3322_v54 }
 0x3d5   :  { %v1059_v10 = vmax.f32 %v1051_v9, 0.0  ;;  %v3120_v7 = vpop.f32.mrb[18].mxu0  ;;  %p3517_p1 = por %p3516_p0, %p3515_p13 }
 0x3d6   :  { %v1075_v16 = vrot.slane %v1074_v12, 2  ;;  %v1082_v17 = vrot.slane %v1081_v13, 4  ;;  %v1089_v18 = vsel %vm609_vm1, %v1060_v15, 0.0  ;;  %v1272_v19 = vpop.f32.mrb[19].mxu0  ;;  %v3127_v23 = vpop.f32.mrb[16].mxu1  ;;  %v1068_v30 = vrot.slane %v1067_v11, 1 }
 0x3d7   :  { %v1088_v20 = vsel %vm609_vm1, %v1059_v10, 0.0  ;;  %3142 = vmatprep.mubr.msk.f32.mxu1 %vm1455_vm5, %v1272_v19  ;;  %v1356_v26 = vpop.f32.mrb[17].mxu1  ;;  %p3518_p2 = pnand %p3517_p1, %p3511_p12 }
 0x3d8   :  { %v1076_v31 = vadd.f32 %v1075_v16, %v1074_v12  ;;  %v1083_v32 = vadd.f32 %v1082_v17, %v1081_v13  ;;  %v1090_v33 = vadd.f32 %v1089_v18, %v1088_v20  ;;  %3143 = vmatmul.mubr.msk.f32.gmra.mrb[20].mxu1 %vm1455_vm5, %v3120_v7  ;;  %v1069_v39 = vadd.f32 %v1068_v30, %v1067_v11 }
 0x3d9   :  { %3145 = vmatprep.mubr.msk.f32.mxu1 %vm1455_vm5, %v1356_v26  ;;  %v3134_v34 = vpop.f32.mrb[20].mxu0 }
 0x3da   :  { %v1077_v35 = vrot.slane %v1076_v31, 1  ;;  %v1084_v36 = vrot.slane %v1083_v32, 2  ;;  %v1091_v37 = vrot.slane %v1090_v33, 4  ;;  %v1440_v38 = vpop.f32.mrb[21].mxu0 }
 0x3dc   :  { %v1078_v40 = vadd.f32 %v1077_v35, %v1076_v31  ;;  %v1085_v41 = vadd.f32 %v1084_v36, %v1083_v32  ;;  %v1092_v42 = vadd.f32 %v1091_v37, %v1090_v33  ;;  %3146 = vmatmul.mubr.msk.f32.gmra.mrb[22].mxu1 %vm1455_vm5, %v3127_v23  ;;  %v2094_v35 = vld [vmem:[%s4098_s12 + $0x10] sm:$0xff]  ;;  %v2095_v36 = vld [vmem:[%s4098_s12 + $0x18] sm:$0xff]  ;;  %v2097_v37 = vld [vmem:[%s4098_s12 + $0x28] sm:$0xff] }
 0x3dd   :  { %3148 = vmatprep.mubr.msk.f32.mxu1 %vm1455_vm5, %v1440_v38 }
 0x3de   :  { %v1086_v43 = vrot.slane %v1085_v41, 1  ;;  %v1093_v44 = vrot.slane %v1092_v42, 2  ;;  %v1098_v45 = vsel %vm1097_vm6, %v1069_v39, %v1078_v40  ;;  %v2098_v39 = vld [vmem:[%s4098_s12 + $0x30] sm:$0xff]  ;;  %v2099_v40 = vld [vmem:[%s4098_s12 + $0x38] sm:$0xff] }
 0x3e0   :  { %v1087_v46 = vadd.f32 %v1086_v43, %v1085_v41  ;;  %v1094_v47 = vadd.f32 %v1093_v44, %v1092_v42  ;;  %3149 = vmatmul.mubr.msk.f32.gmra.mrb[24].mxu1 %vm1455_vm5, %v3134_v34  ;;  %v3548_v34 = vmov 0.0|0.0   ;;  %v3346_v41 = vpack.c.bf16 %v2099_v40, %v2098_v39  ;;  %v2869_v42 = vld [vmem:[#allocation7] ss:$0 sm:$0xff] }
 0x3e1   :  { %3175 = vmatprep.mubr.msk.f32.mxu1 %vm127_vm0, %v3843_v14  ;;  %v2843_v14 = vld [vmem:[#allocation5] ss:$0 sm:$0xff] }
 0x3e2   :  { %v1095_v48 = vrot.slane %v1094_v47, 1  ;;  %v1100_v49 = vsel %vm1099_vm7, %v1098_v45, %v1087_v46 }
 0x3e4   :  { %v1096_v50 = vadd.f32 %v1095_v48, %v1094_v47 }
 0x3e6   :  { %v3937_v51 = vsel %vm1101_vm8, %v1100_v49, %v1096_v50 }
 0x4a7   :  { %v3141_v55 = vpop.f32.mrb[18].mxu1 }
 0x4a8   :  { %v1556_v56 = vadd.f32 %v3141_v55, %v2843_v14  ;;  %v1550_v57 = vpop.f32.mrb[19].mxu1 }
 0x4a9   :  { %v1551_v58 = vadd.f32 %v2843_v14, %v1550_v57 }
 0x4aa   :  { %v1590_v61 = vmax.f32 %v1556_v56, 0.0 }
 0x4ab   :  { %v1589_v59 = vmax.f32 %v1551_v58, 0.0  ;;  %v3144_v60 = vpop.f32.mrb[20].mxu1 }
 0x4ac   :  { %v1566_v62 = vadd.f32 %v3144_v60, %v2843_v14  ;;  %v1560_v63 = vpop.f32.mrb[21].mxu1 }
 0x4ad   :  { %v1561_v0 = vadd.f32 %v2843_v14, %v1560_v63  ;;  %3159 = vmatprep.mubr.msk.f32.mxu0 %vm609_vm1, %v1589_v59 }
 0x4ae   :  { %3160 = vmatmul.mubr.msk.f32.vlgmr.msra.gmra.mrb[22].mxu0 %vm609_vm1, %v1590_v61  ;;  %v1592_v3 = vmax.f32 %v1566_v62, 0.0 }
 0x4af   :  { %v1591_v1 = vmax.f32 %v1561_v0, 0.0  ;;  %v3147_v2 = vpop.f32.mrb[22].mxu1 }
 0x4b0   :  { %v1576_v4 = vadd.f32 %v3147_v2, %v2843_v14  ;;  %v1570_v5 = vpop.f32.mrb[23].mxu1 }
 0x4b1   :  { %v1571_v6 = vadd.f32 %v2843_v14, %v1570_v5  ;;  %3162 = vmatprep.mubr.msk.f32.mxu0 %vm609_vm1, %v1591_v1 }
 0x4b2   :  { %3163 = vmatmul.mubr.msk.f32.gmra.mrb[24].mxu0 %vm609_vm1, %v1592_v3  ;;  %v1594_v11 = vmax.f32 %v1576_v4, 0.0 }
 0x4b3   :  { %v1593_v8 = vmax.f32 %v1571_v6, 0.0  ;;  %v3150_v9 = vpop.f32.mrb[24].mxu1 }
 0x4b4   :  { %v1586_v12 = vadd.f32 %v3150_v9, %v2843_v14  ;;  %v1580_v13 = vpop.f32.mrb[25].mxu1 }
 0x4b5   :  { %v1581_v15 = vadd.f32 %v2843_v14, %v1580_v13  ;;  %3165 = vmatprep.mubr.msk.f32.mxu0 %vm609_vm1, %v1593_v8 }
 0x4b6   :  { %3166 = vmatmul.mubr.msk.f32.gmra.mrb[26].mxu0 %vm609_vm1, %v1594_v11  ;;  %v1596_v7 = vmax.f32 %v1586_v12, 0.0 }
 0x4b7   :  { %v1595_v10 = vmax.f32 %v1581_v15, 0.0 }
 0x4b9   :  { %3168 = vmatprep.mubr.msk.f32.mxu0 %vm609_vm1, %v1595_v10 }
 0x4ba   :  { %3169 = vmatmul.mubr.msk.f32.gmra.mrb[28].mxu0 %vm609_vm1, %v1596_v7 }
 0x4bb   :  { %3189 = vmatprep.mubr.msk.f32.mxu0 %vm127_vm0, %v3868_v25 }
 0x581   :  { %v3161_v16 = vpop.f32.mrb[22].mxu0 }
 0x582   :  { %v1692_v17 = vpop.f32.mrb[23].mxu0 }
 0x583   :  { %v3326_v18 = vpack.c.bf16 %v3161_v16, %v1692_v17 }
 0x585   :  { %v3164_v19 = vpop.f32.mrb[24].mxu0  ;;  %3327 = vmatprep.subr.bf16.mxu1 %v3326_v18 }
 0x586   :  { %v1702_v23 = vpop.f32.mrb[25].mxu0  ;;  %3329 = vmatpush3.bf16.msra.mxu1 %v3326_v18 }
 0x587   :  { %v3330_v20 = vpack.c.bf16 %v3164_v19, %v1702_v23 }
 0x589   :  { %v3167_v26 = vpop.f32.mrb[26].mxu0  ;;  %3331 = vmatprep.subr.bf16.mxu1 %v3330_v20  ;;  %3176 = vmatmul.mubr.msk.f32.vlgmr.msra.gmra.mrb[26].mxu1 %vm127_vm0, %v3856_v24  ;;  %v2092_v24 = vld [vmem:[%s4098_s12] sm:$0xff] }
 0x58a   :  { %v1712_v30 = vpop.f32.mrb[27].mxu0  ;;  %3333 = vmatpush3.bf16.msra.mxu1 %v3330_v20  ;;  %3182 = vmatprep.mubr.msk.f32.mxu1 %vm127_vm0, %v3863_v21  ;;  %v2093_v21 = vld [vmem:[%s4098_s12 + $0x8] sm:$0xff] }
 0x58b   :  { %v3334_v31 = vpack.c.bf16 %v3167_v26, %v1712_v30 }
 0x58d   :  { %v3170_v25 = vpop.f32.mrb[28].mxu0  ;;  %3335 = vmatprep.subr.bf16.mxu0 %v3334_v31  ;;  %3183 = vmatmul.mubr.msk.f32.vlgmr.msra.gmra.mrb[28].mxu1 %vm127_vm0, %v3879_v27  ;;  %v3349_v27 = vpack.c.bf16 %v2093_v21, %v2092_v24 }
 0x58e   :  { %v1722_v32 = vpop.f32.mrb[29].mxu0  ;;  %3337 = vmatpush3.bf16.msra.mxu0 %v3334_v31  ;;  %3196 = vmatprep.mubr.msk.f32.mxu1 %vm127_vm0, %v3891_v28  ;;  %v3550_v28 = vmov 0.0  }
 0x58f   :  { %v3338_v33 = vpack.c.bf16 %v3170_v25, %v1722_v32  ;;  %3342 = vmatprep.subr.bf16.mxu0 %v3548_v34 }
 0x591   :  { %3339 = vmatprep.subr.bf16.mxu1 %v3338_v33  ;;  %3190 = vmatmul.mubr.msk.f32.vlgmr.msra.gmra.mrb[30].mxu0 %vm127_vm0, %v3886_v22  ;;  %v3352_v22 = vpack.c.bf16 %v2095_v36, %v2094_v35 }
 0x592   :  { %3341 = vmatpush3.bf16.msra.mxu1 %v3338_v33  ;;  %3207 = vmatprep.mubr.msk.f32.mxu0 %vm3549_vm9, %v3550_v28 }
 0x593   :  { %3348 = vmatprep.subr.bf16.mxu1 %v3548_v34 }
 0x595   :  { %3197 = vmatmul.mubr.msk.f32.vlgmr.msra.gmra.mrb[30].mxu1 %vm127_vm0, %v3900_v29  ;;  %v2096_v29 = vld [vmem:[%s4098_s12 + $0x20] sm:$0xff] }
 0x596   :  { %3350 = vmatpush3.bf16.msra.mxu1 %v3349_v27  ;;  %3218 = vmatprep.mubr.msk.f32.mxu1 %vm3549_vm9, %v3550_v28  ;;  %v3343_v38 = vpack.c.bf16 %v2097_v37, %v2096_v29 }
 0x597   :  { %3351 = vmatprep.subr.bf16.mxu1 %v3548_v34 }
 0x598   :  { %3344 = vmatpush3.bf16.msra.mxu0 %v3343_v38 }
 0x599   :  { %3345 = vmatprep.subr.bf16.mxu0 %v3548_v34 }
 0x59a   :  { %3353 = vmatpush3.bf16.msra.mxu1 %v3352_v22 }
 0x59b   :  { %3232 = vmatprep.subr.mxu1 %v3550_v28 }
 0x59c   :  { %3347 = vmatpush3.bf16.msra.mxu0 %v3346_v41 }
 0x59d   :  { %3219 = vmatmul.mubr.msk.f32.vlgmr.msra.gmra.mrb[32].mxu1 %vm609_vm1, %v3937_v51  ;;  %3354 = vmatprep.subr.bf16.mxu0 %v3548_v34 }
 0x59e   :  { %3234 = vmatprep.mubr.msk.f32.mxu1 %vm3549_vm9, %v3550_v28 }
 0x65c   :  { %v3177_v43 = vpop.f32.mrb[26].mxu1 }
 0x65d   :  { %v2038_v44 = vadd.f32 %v3177_v43, %v2869_v42  ;;  %v1797_v45 = vpop.f32.mrb[27].mxu1 }
 0x65e   :  { %v2037_v46 = vadd.f32 %v2869_v42, %v1797_v45 }
 0x65f   :  { %v2046_v47 = vmax.f32 %v2038_v44, 0.0 }
 0x660   :  { %v2045_v48 = vmax.f32 %v2037_v46, 0.0  ;;  %v3184_v49 = vpop.f32.mrb[28].mxu1 }
 0x661   :  { %v2054_v50 = vsel %vm609_vm1, %v2046_v47, 0.0  ;;  %v2040_v52 = vadd.f32 %v3184_v49, %v2869_v42  ;;  %v1872_v53 = vpop.f32.mrb[29].mxu1  ;;  %v2352_v49 = vmul.f32 %v3937_v51, %v3937_v51 }
 0x662   :  { %v2053_v54 = vsel %vm609_vm1, %v2045_v48, 0.0  ;;  %v2039_v14 = vadd.f32 %v2869_v42, %v1872_v53  ;;  %v2256_v53 = vld [vmem:[%s4100_s14 + $0x8] sm:$0xff] }
 0x663   :  { %v2055_v55 = vadd.f32 %v2054_v50, %v2053_v54  ;;  %v2048_v56 = vmax.f32 %v2040_v52, 0.0  ;;  %v2354_v50 = vsel %vm2353_vm10, %v2352_v49, 0.0  ;;  %v2255_v52 = vld [vmem:[%s4100_s14] sm:$0xff]  ;;  %v2257_v54 = vld [vmem:[%s4100_s14 + $0x10] sm:$0xff] }
 0x664   :  { %v2047_v57 = vmax.f32 %v2039_v14, 0.0  ;;  %v3191_v58 = vpop.f32.mrb[30].mxu0  ;;  %v3355_v14 = vpack.c.bf16 %v2256_v53, %v2255_v52 }
 0x665   :  { %v2056_v59 = vrot.slane %v2055_v55, 4  ;;  %v2063_v60 = vsel %vm609_vm1, %v2048_v56, 0.0  ;;  %v2042_v61 = vadd.f32 %v3191_v58, %v2869_v42  ;;  %v1947_v62 = vpop.f32.mrb[31].mxu0 }
 0x666   :  { %v2062_v63 = vsel %vm609_vm1, %v2047_v57, 0.0  ;;  %v2041_v0 = vadd.f32 %v2869_v42, %v1947_v62 }
 0x667   :  { %v2057_v1 = vadd.f32 %v2056_v59, %v2055_v55  ;;  %v2064_v2 = vadd.f32 %v2063_v60, %v2062_v63  ;;  %v2050_v3 = vmax.f32 %v2042_v61, 0.0  ;;  %v2258_v55 = vld [vmem:[%s4100_s14 + $0x18] sm:$0xff] }
 0x668   :  { %v2049_v4 = vmax.f32 %v2041_v0, 0.0  ;;  %v3198_v5 = vpop.f32.mrb[30].mxu1  ;;  %v3358_v56 = vpack.c.bf16 %v2258_v55, %v2257_v54 }
 0x669   :  { %v2058_v6 = vrot.slane %v2057_v1, 2  ;;  %v2065_v8 = vrot.slane %v2064_v2, 4  ;;  %v2072_v9 = vsel %vm609_vm1, %v2050_v3, 0.0  ;;  %v2044_v11 = vadd.f32 %v3198_v5, %v2869_v42  ;;  %v2022_v12 = vpop.f32.mrb[31].mxu1 }
 0x66a   :  { %v2071_v13 = vsel %vm609_vm1, %v2049_v4, 0.0  ;;  %v2043_v15 = vadd.f32 %v2869_v42, %v2022_v12 }
 0x66b   :  { %v2059_v10 = vadd.f32 %v2058_v6, %v2057_v1  ;;  %v2066_v7 = vadd.f32 %v2065_v8, %v2064_v2  ;;  %v2073_v16 = vadd.f32 %v2072_v9, %v2071_v13  ;;  %v2052_v17 = vmax.f32 %v2044_v11, 0.0 }
 0x66c   :  { %v2051_v18 = vmax.f32 %v2043_v15, 0.0 }
 0x66d   :  { %v2067_v19 = vrot.slane %v2066_v7, 2  ;;  %v2074_v23 = vrot.slane %v2073_v16, 4  ;;  %v2081_v20 = vsel %vm609_vm1, %v2052_v17, 0.0  ;;  %v2060_v30 = vrot.slane %v2059_v10, 1 }
 0x66e   :  { %v2080_v26 = vsel %vm609_vm1, %v2051_v18, 0.0 }
 0x66f   :  { %v2068_v31 = vadd.f32 %v2067_v19, %v2066_v7  ;;  %v2075_v25 = vadd.f32 %v2074_v23, %v2073_v16  ;;  %v2082_v32 = vadd.f32 %v2081_v20, %v2080_v26  ;;  %v2061_v36 = vadd.f32 %v2060_v30, %v2059_v10 }
 0x670   :  { %v4013_v33 = vpop.f32.mrb[32].mxu1 }
 0x671   :  { %v2069_v24 = vrot.slane %v2068_v31, 1  ;;  %v2076_v21 = vrot.slane %v2075_v25, 2  ;;  %v2083_v27 = vrot.slane %v2082_v32, 4  ;;  %v3220_v35 = vpop.f32.mrb[33].mxu1 }
 0x673   :  { %v2070_v22 = vadd.f32 %v2069_v24, %v2068_v31  ;;  %v2077_v29 = vadd.f32 %v2076_v21, %v2075_v25  ;;  %v2084_v37 = vadd.f32 %v2083_v27, %v2082_v32  ;;  %v2671_v32 = vlaneseq }
 0x675   :  { %v2078_v38 = vrot.slane %v2077_v29, 1  ;;  %v2085_v39 = vrot.slane %v2084_v37, 2  ;;  %v2089_v40 = vsel %vm1097_vm6, %v2061_v36, %v2070_v22  ;;  %v2674_v24 = vand.u32 127, %v2671_v32 }
 0x677   :  { %v2079_v41 = vadd.f32 %v2078_v38, %v2077_v29  ;;  %v2086_v42 = vadd.f32 %v2085_v39, %v2084_v37 }
 0x679   :  { %v2087_v43 = vrot.slane %v2086_v42, 1  ;;  %v2090_v44 = vsel %vm1099_vm7, %v2089_v40, %v2079_v41 }
 0x67b   :  { %v2088_v45 = vadd.f32 %v2087_v43, %v2086_v42 }
 0x67d   :  { %v2091_v46 = vsel %vm1101_vm8, %v2090_v44, %v2088_v45 }
 0x67e   :  { %3208 = vmatmul.mubr.msk.f32.vlgmr.msra.gmra.mrb[32].mxu0 %vm609_vm1, %v2091_v46  ;;  %v2367_v47 = vmul.f32 %v2091_v46, %v2091_v46 }
 0x67f   :  { %3229 = vmatprep.mubr.msk.f32.mxu0 %vm3549_vm9, %v3550_v28  ;;  %3356 = vmatpush3.bf16.msra.mxu0 %v3355_v14 }
 0x680   :  { %v2368_v48 = vsel %vm2353_vm10, %v2367_v47, 0.0  ;;  %3357 = vmatprep.subr.bf16.mxu0 %v3548_v34 }
 0x681   :  { %2369 = vadd.xlane.f32.xlu0 %v2368_v48 }
 0x683   :  { %3359 = vmatpush3.bf16.msra.mxu0 %v3358_v56 }
 0x684   :  { %3242 = vmatprep.subr.mxu0 %v3550_v28 }
 0x685   :  { %2355 = vadd.xlane.f32.xlu0 %v2354_v50 }
 0x70e   :  { %v2370_v57 = vpop.xlane.xlu0 %2369 }
 0x70f   :  { %3376 = vrsqrt.f32 %v2370_v57  ;;  %vm2373_vm11 = vcmp.eq.f32.partialorder %v2370_v57, inf  ;;  %v2376_v61 = vand.u32 2147483648, %v2370_v57  ;;  %vm2375_vm12 = vcmp.eq.f32.partialorder %v2370_v57, 0.0 }
 0x712   :  { %v2356_v58 = vpop.xlane.xlu0 %2355 }
 0x713   :  { %3378 = vrsqrt.f32 %v2356_v58  ;;  %vm2359_vm13 = vcmp.eq.f32.partialorder %v2356_v58, inf  ;;  %v2362_v3 = vand.u32 2147483648, %v2356_v58  ;;  %vm2361_vm14 = vcmp.eq.f32.partialorder %v2356_v58, 0.0 }
 0x719   :  { %v3377_v59 = vpop.eup %3376 }
 0x71a   :  { %v2372_v60 = vmul.f32 %v3377_v59, %v2370_v57 }
 0x71c   :  { %v2374_v62 = vsel %vm2373_vm11, %v2370_v57, %v2372_v60 }
 0x71d   :  { %v3379_v63 = vpop.eup %3378  ;;  %v2377_v0 = vsel %vm2375_vm12, %v2376_v61, %v2374_v62 }
 0x71e   :  { %v2378_v1 = vmax.f32 %v2377_v0, 1e-12  ;;  %v2358_v2 = vmul.f32 %v3379_v63, %v2356_v58 }
 0x720   :  { %3380 = vrcp.f32 %v2378_v1  ;;  %v2360_v34 = vsel %vm2359_vm13, %v2356_v58, %v2358_v2  ;;  %v2873_v2 = vld [vmem:[#allocation10] ss:$0 sm:$0xff] }
 0x721   :  { %v2363_v4 = vsel %vm2361_vm14, %v2362_v3, %v2360_v34 }
 0x722   :  { %v2364_v5 = vmax.f32 %v2363_v4, 1e-12 }
 0x724   :  { %3382 = vrcp.f32 %v2364_v5 }
 0x72a   :  { %v3381_v6 = vpop.eup %3380 }
 0x72b   :  { %v2380_v8 = vmul.f32 %v3381_v6, %v2091_v46 }
 0x72d   :  { %3233 = vmatpush3.xpose.msk.msra.mxu1 %vm609_vm1, %v2380_v8 }
 0x72e   :  { %v3383_v9 = vpop.eup %3382  ;;  %3237 = vmatprep.subr.mxu1 %v3550_v28 }
 0x72f   :  { %v2366_v11 = vmul.f32 %v3383_v9, %v3937_v51  ;;  %v2872_v51 = vld [vmem:[#allocation8] ss:$0 sm:$0xff] }
 0x731   :  { %3235 = vmatmul.mubr.msk.f32.vlgmr.msra.gmra.mrb[34].mxu1 %vm609_vm1, %v2366_v11 }
 0x732   :  { %3238 = vmatpush3.xpose.msk.msra.mxu1 %vm609_vm1, %v2366_v11  ;;  %3239 = vmatprep.mubr.msk.f32.mxu1 %vm3549_vm9, %v3550_v28 }
 0x733   :  { %3247 = vmatprep.subr.mxu1 %v3550_v28 }
 0x735   :  { %3240 = vmatmul.mubr.msk.f32.vlgmr.msra.gmra.mrb[36].mxu1 %vm609_vm1, %v2380_v8 }
 0x736   :  { %3248 = vmatpush3.xpose.msk.msra.mxu1 %vm609_vm1, %v2380_v8  ;;  %3249 = vmatprep.mubr.msk.f32.mxu1 %vm3549_vm9, %v3550_v28 }
 0x739   :  { %3250 = vmatmul.mubr.msk.f32.vlgmr.msra.gmra.mrb[38].mxu1 %vm609_vm1, %v2380_v8 }
 0x751   :  { %v2169_v12 = vpop.f32.mrb[32].mxu0 }
 0x752   :  { %v2243_v13 = vadd.f32 %v4013_v33, %v2169_v12  ;;  %v3209_v15 = vpop.f32.mrb[33].mxu0  ;;  %v2672_v33 = vshrl.u32 %v2671_v32, 7 }
 0x754   :  { %v2253_v10 = vadd.f32 %v2872_v51, %v2243_v13  ;;  %vm2675_vm0 = vcmp.eq.s32.totalorder %v2672_v33, %v2674_v24 }
 0x755   :  { %v2883_v35 = vsel %vm2675_vm0, 1.0, %v3550_v28 }
 0x756   :  { %v2254_v7 = vmax.f32 %v2253_v10, 0.0  ;;  %v2678_v22 = vsub.f32 1.0, %v2883_v35 }
 0x758   :  { %3230 = vmatmul.mubr.msk.f32.vlgmr.msra.gmra.mrb[34].mxu0 %vm609_vm1, %v2254_v7 }
 0x759   :  { %3243 = vmatpush3.xpose.msk.msra.mxu0 %vm609_vm1, %v2366_v11  ;;  %3244 = vmatprep.mubr.msk.f32.mxu0 %vm3549_vm9, %v3550_v28 }
 0x75c   :  { %3245 = vmatmul.mubr.msk.f32.vlgmr.msra.gmra.mrb[36].mxu0 %vm609_vm1, %v2366_v11  ;;  %vm2712_vm1 = vcmask 3072  }
 0x804   :  { %v2453_v16 = vpop.f32.mrb[34].mxu1 }
 0x805   :  { %v2457_v17 = vmul.f32 2.0, %v2453_v16  ;;  %v3236_v18 = vpop.f32.mrb[35].mxu1 }
 0x807   :  { %v2684_v19 = vsel %vm2683_vm15, %v2457_v17, -inf  ;;  %v2704_v1 = vmul.f32 %v2883_v35, %v2457_v17 }
 0x808   :  { %2685 = vmax.xlane.f32.xlu1 %v2684_v19  ;;  %v2524_v23 = vpop.f32.mrb[36].mxu1 }
 0x809   :  { %v2528_v20 = vmul.f32 2.0, %v2524_v23  ;;  %v3241_v26 = vpop.f32.mrb[37].mxu1  ;;  %v2705_v5 = vsel %vm2683_vm15, %v2704_v1, 0.0 }
 0x80b   :  { %v2726_v30 = vsel %vm2683_vm15, %v2528_v20, -inf  ;;  %v2746_v34 = vmul.f32 %v2883_v35, %v2528_v20 }
 0x80c   :  { %2727 = vmax.xlane.f32.xlu0 %v2726_v30  ;;  %v2666_v31 = vpop.f32.mrb[38].mxu1 }
 0x80d   :  { %v3251_v25 = vpop.f32.mrb[39].mxu1  ;;  %v2670_v36 = vmul.f32 2.0, %v2666_v31  ;;  %v2747_v6 = vsel %vm2683_vm15, %v2746_v34, 0.0 }
 0x80f   :  { %v2681_v39 = vmul.f32 %v2678_v22, %v2670_v36 }
 0x811   :  { %v2682_v43 = vmul.f32 0.8, %v2681_v39 }
 0x813   :  { %v2729_v44 = vsel %vm2683_vm15, %v2682_v43, -inf }
 0x82b   :  { %v2335_v21 = vpop.f32.mrb[34].mxu0 }
 0x82c   :  { %v3231_v27 = vpop.f32.mrb[35].mxu0  ;;  %v4065_v4 = vadd.f32 %v2873_v2, %v2335_v21 }
 0x82e   :  { %v2339_v8 = vsel %vm1480_vm2, %v4065_v4, -inf }
 0x82f   :  { %v2595_v29 = vpop.f32.mrb[36].mxu0 }
 0x830   :  { %v2599_v37 = vmul.f32 2.0, %v2595_v29  ;;  %v3246_v38 = vpop.f32.mrb[37].mxu0 }
 0x832   :  { %v2679_v40 = vmul.f32 %v2678_v22, %v2599_v37 }
 0x834   :  { %v2680_v41 = vmul.f32 0.8, %v2679_v40 }
 0x836   :  { %v2687_v42 = vsel %vm2683_vm15, %v2680_v41, -inf }
 0x837   :  { %2688 = vmax.xlane.f32.xlu1 %v2687_v42 }
 0x83b   :  { %2730 = vmax.xlane.f32.xlu1 %v2729_v44 }
 0x895   :  { %v2686_v45 = vpop.xlane.xlu1 %2685 }
 0x899   :  { %v2728_v49 = vpop.xlane.xlu0 %2727 }
 0x8c4   :  { %v2689_v46 = vpop.xlane.xlu1 %2688 }
 0x8c5   :  { %v2690_v47 = vmax.f32 %v2686_v45, %v2689_v46 }
 0x8c7   :  { %v2691_v48 = vsub.f32 %v2457_v17, %v2690_v47  ;;  %v2697_v28 = vsub.f32 %v2680_v41, %v2690_v47 }
 0x8c8   :  { %v2731_v50 = vpop.xlane.xlu1 %2730 }
 0x8c9   :  { %v2692_v52 = vmul.f32 1.442695, %v2691_v48  ;;  %v2698_v53 = vmul.f32 1.442695, %v2697_v28  ;;  %v2732_v54 = vmax.f32 %v2728_v49, %v2731_v50 }
 0x8cb   :  { %3384 = vpow2.f32 %v2692_v52  ;;  %v2733_v14 = vsub.f32 %v2528_v20, %v2732_v54  ;;  %v2739_v55 = vsub.f32 %v2682_v43, %v2732_v54 }
 0x8cc   :  { %3386 = vpow2.f32 %v2698_v53 }
 0x8cd   :  { %v2734_v56 = vmul.f32 1.442695, %v2733_v14  ;;  %v2740_v57 = vmul.f32 1.442695, %v2739_v55 }
 0x8cf   :  { %3388 = vpow2.f32 %v2734_v56 }
 0x8d0   :  { %3390 = vpow2.f32 %v2740_v57 }
 0x8d5   :  { %v3385_v58 = vpop.eup %3384 }
 0x8d6   :  { %v3387_v59 = vpop.eup %3386  ;;  %v2694_v60 = vsel %vm2683_vm15, %v3385_v58, 0.0 }
 0x8d7   :  { %2695 = vadd.xlane.f32.xlu0 %v2694_v60  ;;  %v2700_v61 = vsel %vm2683_vm15, %v3387_v59, 0.0 }
 0x8d8   :  { %2701 = vadd.xlane.f32.xlu1 %v2700_v61 }
 0x8d9   :  { %v3389_v62 = vpop.eup %3388 }
 0x8da   :  { %v3391_v63 = vpop.eup %3390  ;;  %v2736_v0 = vsel %vm2683_vm15, %v3389_v62, 0.0 }
 0x8db   :  { %v2742_v3 = vsel %vm2683_vm15, %v3391_v63, 0.0  ;;  %2737 = vadd.xlane.f32.xlu0 %v2736_v0 }
 0x8dc   :  { %2743 = vadd.xlane.f32.xlu1 %v2742_v3 }
 0x8df   :  { %2706 = vadd.xlane.f32.xlu0 %v2705_v5 }
 0x8e0   :  { %2748 = vadd.xlane.f32.xlu1 %v2747_v6 }
 0x8e3   :  { %2340 = vmax.xlane.f32.xlu0 %v2339_v8 }
 0x964   :  { %v2696_v9 = vpop.xlane.xlu0 %2695 }
 0x965   :  { %v2702_v11 = vpop.xlane.xlu1 %2701 }
 0x966   :  { %v2703_v12 = vadd.f32 %v2702_v11, %v2696_v9 }
 0x968   :  { %3392 = vlog2.f32 %v2703_v12  ;;  %v2738_v51 = vpop.xlane.xlu0 %2737 }
 0x969   :  { %v2744_v13 = vpop.xlane.xlu1 %2743 }
 0x96a   :  { %v2745_v15 = vadd.f32 %v2744_v13, %v2738_v51 }
 0x96c   :  { %3394 = vlog2.f32 %v2745_v15  ;;  %v2707_v10 = vpop.xlane.xlu0 %2706 }
 0x96d   :  { %v2710_v19 = vsub.f32 %v2707_v10, %v2690_v47  ;;  %v2749_v20 = vpop.xlane.xlu1 %2748 }
 0x96e   :  { %v2752_v25 = vsub.f32 %v2749_v20, %v2732_v54 }
 0x970   :  { %v2341_v7 = vpop.xlane.xlu0 %2340 }
 0x971   :  { %v2342_v16 = vsub.f32 %v4065_v4, %v2341_v7 }
 0x972   :  { %v3393_v17 = vpop.eup %3392 }
 0x973   :  { %v2709_v18 = vmul.f32 0.6931472, %v3393_v17  ;;  %v2343_v23 = vmul.f32 1.442695, %v2342_v16 }
 0x975   :  { %3396 = vpow2.f32 %v2343_v23  ;;  %v2711_v26 = vsub.f32 %v2709_v18, %v2710_v19 }
 0x976   :  { %v3395_v30 = vpop.eup %3394 }
 0x977   :  { %v2751_v31 = vmul.f32 0.6931472, %v3395_v30  ;;  %v2713_v32 = vsel %vm2712_vm1, %v2711_v26, 0.0 }
 0x978   :  { %2714 = vadd.xlane.f32.xlu1 %v2713_v32 }
 0x979   :  { %v2753_v33 = vsub.f32 %v2751_v31, %v2752_v25 }
 0x97b   :  { %v2754_v24 = vsel %vm2712_vm1, %v2753_v33, 0.0 }
 0x97c   :  { %2755 = vadd.xlane.f32.xlu0 %v2754_v24 }
 0x97f   :  { %v3397_v21 = vpop.eup %3396 }
 0x980   :  { %v2345_v27 = vsel %vm1480_vm2, %v3397_v21, 0.0 }
 0x981   :  { %2346 = vadd.xlane.f32.xlu1 %v2345_v27 }
 0xa05   :  { %v2715_v35 = vpop.xlane.xlu1 %2714 }
 0xa06   :  { %v2716_v36 = vrot.slane %v2715_v35, 4 }
 0xa08   :  { %v2717_v22 = vadd.f32 %v2716_v36, %v2715_v35 }
 0xa09   :  { %v2756_v29 = vpop.xlane.xlu0 %2755 }
 0xa0a   :  { %v2718_v37 = vrot.slane %v2717_v22, 2  ;;  %v2757_v38 = vrot.slane %v2756_v29, 4 }
 0xa0c   :  { %v2758_v39 = vadd.f32 %v2757_v38, %v2756_v29  ;;  %v2719_v40 = vadd.f32 %v2718_v37, %v2717_v22 }
 0xa0e   :  { %v2759_v41 = vrot.slane %v2758_v39, 2  ;;  %v2720_v42 = vrot.slane %v2719_v40, 1  ;;  %v2347_v47 = vpop.xlane.xlu1 %2346 }
 0xa0f   :  { %3398 = vlog2.f32 %v2347_v47 }
 0xa10   :  { %v2760_v43 = vadd.f32 %v2759_v41, %v2758_v39  ;;  %v2721_v44 = vadd.f32 %v2720_v42, %v2719_v40 }
 0xa12   :  { %3360 = vpush %v2721_v44  ;;  %v2761_v45 = vrot.slane %v2760_v43, 1 }
 0xa14   :  { %v2762_v46 = vadd.f32 %v2761_v45, %v2760_v43 }
 0xa16   :  { %3362 = vpush %v2762_v46 }
 0xa19   :  { %v3399_v48 = vpop.eup %3398 }
 0xa1a   :  { %v2349_v28 = vmul.f32 0.6931472, %v3399_v48 }
 0xa1c   :  { %v2350_v49 = vadd.f32 %v2349_v28, %v2341_v7 }
 0xa1e   :  { %v2351_v50 = vsub.f32 %v4065_v4, %v2350_v49 }
 0xa43   :  { %s3361_s14 = spop %3360 }
 0xa44   :  { %s2725_s22 = smul.f32 0.25, %s3361_s14 }
 0xa47   :  { %s3363_s7 = spop %3362 }
 0xa48   :  { %s2766_s19 = smul.f32 0.25, %s3363_s7 }
 0xa4a   :  { %s2767_s20 = sadd.f32 %s2766_s19, %s2725_s22 }
 0xa4c   :  { %s2768_s21 = smul.f32 0.5, %s2767_s20 }
 0xa4e   :  { %v2769_v52 = vstv %s2768_s21 }
 0xa4f   :  { %v2770_v53 = vadd.f32 %v2769_v52, %v2351_v50 }
 0xa51   :  { %2771 = vst [vmem:[#allocation11] sm:$0xf] %v2770_v53 }
 0xa52   :  { %3521 = shalt.err (!%p3518_p2)
}
 0xa53   :  { %s3522_s25 = scalar_lea.hbm %s4102_s16, 64 }
 0xa54   :  { %p3523_p3 = scmp.ne.s32.totalorder %s4102_s16, %s3522_s25  ;;  %p3526_p4 = scmp.lt.u32.totalorder %s3522_s25, %s4102_s16 }
 0xa56   :  { %p3528_p5 = pnand %p3526_p4, %p3523_p3 }
 0xa58   :  { %3531 = shalt.err (!%p3528_p5)
}
 0xa59   :  { %2781 = dma.vmem_to_hbm [thread:$0]  %s2779_s23, 64, %s4102_s16, [#allocation4]  }
 0xa5a   :  { %3538 = dma.done.wait [#allocation4], 64  }
 0xa5b   :  { %3539 = vsyncadd [#allocation4], 4294967232 }
 0xa5c   :  { %2785 = vsyncpa [#allocation3], 1 }
 0xa5d   :  { %2786 = vsyncpa [#allocation6], 1 }
 0xa5e   :  { %2787 = vsyncpa [#allocation9], 1 }
 0xa5f   :  { %2788 = vsyncpa [#allocation4], 1 }

</bundles_post_ra>
